<compile_context>
chip_gen: v7x
topology: tpu7x:2x2x1
jax: 0.10.0
libtpu: 0.0.40
codegen_flags: <defaults>
</compile_context>

<pallas_src>
import jax
import jax.numpy as jnp
from jax.experimental import pallas as pl
from jax.experimental.pallas import tpu as pltpu


def _make_att_kernel(B, C, H, W):
    """Builds the kernel for fixed (B, C, H, W); x is fused as (B*C, H*W)."""
    HW = H * W
    pow2_w = (W & (W - 1)) == 0 and W > 0

    def kernel(x_ref, w_ref, b_ref, o_ref):
        # x_ref : VMEM (B*C, HW)   fused batch*channel rows, lane-dense pixels
        # w_ref : VMEM (C, 9*C)    folded weight columns; w_ref[:, t*C+ci] is
        #                          the (C_out, 1) column for tap t, in-chan ci
        # b_ref : VMEM (C, 1)      folded bias column (bias/6 + 1/2)
        # o_ref : VMEM (B*C, HW)
        xb = x_ref[...].astype(jnp.float32)                       # (B*C, HW)

        # ---- boundary masks: built ONCE, reused by all 9 taps (hoisted) ----
        lane = jax.lax.broadcasted_iota(jnp.int32, (1, HW), 1)
        if pow2_w:
            hh = lane >> (W.bit_length() - 1)
            ww = lane & (W - 1)
        else:
            hh = lane // W
            ww = lane % W
        row_ok = {-1: hh >= 1, 0: None, 1: hh < H - 1}
        col_ok = {-1: ww >= 1, 0: None, 1: ww < W - 1}

        # One (C_out, HW) f32 accumulator per batch element (VPU path; the
        # contraction depth C=4 is far too small for the MXU).
        accs = [jnp.zeros((C, HW), dtype=jnp.float32) for _ in range(B)]

        for ky in range(3):
            for kx in range(3):
                dy, dx = ky - 1, kx - 1
                t = ky * 3 + kx

                # Spatial tap: lane roll of the whole fused block (shared by
                # every batch/channel row).  Masked lanes are exactly the
                # conv's zero padding (and every circularly wrapped lane).
                shift = (-(dy * W + dx)) % HW
                tap = xb if shift == 0 else pltpu.roll(xb, shift, axis=1)
                mask = row_ok[dy]
                if col_ok[dx] is not None:
                    mask = col_ok[dx] if mask is None else mask & col_ok[dx]
                if mask is not None:
                    tap = jnp.where(mask, tap, 0.0)

                # Channel mix as outer-product FMAs: one VMEM weight column
                # per (tap, ci), sublane-broadcast source row per batch.
                for ci in range(C):
                    col = w_ref[:, t * C + ci:t * C + ci + 1]      # (C, 1)
                    for b in range(B):
                        src = jnp.broadcast_to(
                            tap[b * C + ci:b * C + ci + 1, :], (C, HW))
                        accs[b] = accs[b] + col * src

        # Folded Hardsigmoid: att = clip(conv/6 + b/6 + 1/2, 0, 1); out = x*att.
        bcol = b_ref[...]                                          # (C, 1)
        for b in range(B):
            att = jnp.clip(accs[b] + bcol, 0.0, 1.0)
            xb_b = xb[b * C:(b + 1) * C, :]
            o_ref[b * C:(b + 1) * C, :] = (xb_b * att).astype(o_ref.dtype)

    return kernel


@jax.jit
def att_block_lite(x_nchw, weight_oihw, bias):
    """Forward of Att_Block_lite.

    x_nchw      : (B, C, H, W)
    weight_oihw : (C, C, 3, 3)   (PyTorch Conv2d layout)
    bias        : (C,)
    returns     : (B, C, H, W)
    """
    B, Ci, H, W = x_nchw.shape
    Co = weight_oihw.shape[0]
    assert Co == Ci, "x * att needs out_channels == in_channels"
    HW = H * W
    BC = B * Ci

    # Free lane-dense view of NCHW (same byte layout); no pad, no transpose.
    x2 = x_nchw.reshape(BC, HW)

    # Fold Hardsigmoid (y/6 + 1/2) into the conv parameters and lay the
    # weights out as pre-broadcast columns for cheap VMEM reads in-kernel:
    #   w_cols[co, (ky*3+kx)*C + ci] = weight[co, ci, ky, kx] / 6
    w_cols = (weight_oihw.astype(jnp.float32) / 6.0) \
        .transpose(0, 2, 3, 1).reshape(Co, 9 * Ci)
    b_col = (bias.astype(jnp.float32) / 6.0 + 0.5).reshape(Co, 1)

    kernel = _make_att_kernel(B, Ci, H, W)

    # Single fused block: (B*C, HW) = (8, 256) f32 is two full vregs, one DMA
    # in and one dense DMA out, no per-batch grid.
    # TODO(synk): for production H*W add a ("parallel",) grid axis over
    # (batch x row-tiles) with a 1-row halo so VMEM stays bounded per
    # generation (v7x: 64 MiB physical / 32 MiB scoped default) and both v7x
    # TensorCores get work; at this toy size a single step is fastest.
    out2 = pl.pallas_call(
        kernel,
        out_shape=jax.ShapeDtypeStruct((BC, HW), x_nchw.dtype),
        in_specs=[
            pl.BlockSpec(memory_space=pltpu.MemorySpace.VMEM),   # x (fused)
            pl.BlockSpec(memory_space=pltpu.MemorySpace.VMEM),   # weight cols
            pl.BlockSpec(memory_space=pltpu.MemorySpace.VMEM),   # bias col
        ],
        out_specs=pl.BlockSpec(memory_space=pltpu.MemorySpace.VMEM),
    )(x2, w_cols, b_col)

    return out2.reshape(B, Co, H, W)


def reference(x_nchw, weight_oihw, bias):
    conv = jax.lax.conv_general_dilated(
        x_nchw, weight_oihw,
        window_strides=(1, 1), padding=((1, 1), (1, 1)),
        dimension_numbers=("NCHW", "OIHW", "NCHW"),
        precision=jax.lax.Precision.HIGHEST,
    ) + bias[None, :, None, None]
    att = jnp.clip(conv / 6.0 + 0.5, 0.0, 1.0)
    return x_nchw * att


if __name__ == "__main__":
    # Small shapes consistent with the module (Conv2d 3x3, pad 1, Cin == Cout).
    B, C, H, W = 2, 4, 16, 16

    key = jax.random.PRNGKey(0)
    kx_, kw_ = jax.random.split(key)

    x = jax.random.normal(kx_, (B, C, H, W), dtype=jnp.float32)

    # Deterministic "init_weights": kaiming_normal_(fan_out, relu) + zero bias.
    fan_out = C * 3 * 3
    std = (2.0 / fan_out) ** 0.5
    weight = jax.random.normal(kw_, (C, C, 3, 3), dtype=jnp.float32) * std
    bias = jnp.zeros((C,), dtype=jnp.float32)

    out = att_block_lite(x, weight, bias)
    out = jax.block_until_ready(out)

    ref = reference(x, weight, bias)
    assert out.shape == (B, C, H, W)
    assert jnp.allclose(out, ref, atol=1e-5, rtol=1e-5), "mismatch vs reference"

    print("KERNEL_OK")
</pallas_src>

<mosaic_0001>
module attributes {stable_mosaic.version = 11 : i64} {
  func.func @kernel(%arg0: memref<8x256xf32, #tpu.memory_space<vmem>>, %arg1: memref<4x36xf32, #tpu.memory_space<vmem>>, %arg2: memref<4x1xf32, #tpu.memory_space<vmem>>, %arg3: memref<8x256xf32, #tpu.memory_space<vmem>>) attributes {dimension_semantics = [], scalar_prefetch = 0 : i64, scratch_operands = 0 : i64, tpu.core_type = #tpu.core_type<tc>} {
    %c0 = arith.constant 0 : index
    %c0_0 = arith.constant 0 : index
    %0 = vector.load %arg0[%c0, %c0_0] : memref<8x256xf32, #tpu.memory_space<vmem>>, vector<8x256xf32>
    %1 = tpu.iota {dimensions = array<i32: 1>} : vector<1x256xi32>
    %c4_i32 = arith.constant 4 : i32
    %2 = vector.broadcast %c4_i32 : i32 to vector<1x256xi32>
    %3 = arith.shrsi %1, %2 : vector<1x256xi32>
    %c15_i32 = arith.constant 15 : i32
    %4 = vector.broadcast %c15_i32 : i32 to vector<1x256xi32>
    %5 = arith.andi %1, %4 : vector<1x256xi32>
    %c1_i32 = arith.constant 1 : i32
    %6 = vector.broadcast %c1_i32 : i32 to vector<1x256xi32>
    %7 = arith.cmpi sge, %3, %6 : vector<1x256xi32>
    %c15_i32_1 = arith.constant 15 : i32
    %8 = vector.broadcast %c15_i32_1 : i32 to vector<1x256xi32>
    %9 = arith.cmpi slt, %3, %8 : vector<1x256xi32>
    %c1_i32_2 = arith.constant 1 : i32
    %10 = vector.broadcast %c1_i32_2 : i32 to vector<1x256xi32>
    %11 = arith.cmpi sge, %5, %10 : vector<1x256xi32>
    %c15_i32_3 = arith.constant 15 : i32
    %12 = vector.broadcast %c15_i32_3 : i32 to vector<1x256xi32>
    %13 = arith.cmpi slt, %5, %12 : vector<1x256xi32>
    %cst = arith.constant 0.000000e+00 : f32
    %14 = vector.broadcast %cst : f32 to vector<4x256xf32>
    %cst_4 = arith.constant 0.000000e+00 : f32
    %15 = vector.broadcast %cst_4 : f32 to vector<4x256xf32>
    %c17_i32 = arith.constant 17 : i32
    %16 = tpu.dynamic_rotate %0 by %c17_i32 dim 1 : vector<8x256xf32>, i32 -> vector<8x256xf32>
    %17 = arith.andi %7, %11 : vector<1x256xi1>
    %cst_5 = arith.constant 0.000000e+00 : f32
    %18 = vector.shape_cast %17 : vector<1x256xi1> to vector<1x256xi1>
    %19 = vector.broadcast %18 : vector<1x256xi1> to vector<8x256xi1>
    %20 = vector.broadcast %cst_5 : f32 to vector<8x256xf32>
    %21 = arith.select %19, %16, %20 : vector<8x256xi1>, vector<8x256xf32>
    %c0_6 = arith.constant 0 : index
    %c0_7 = arith.constant 0 : index
    %22 = vector.load %arg1[%c0_6, %c0_7] : memref<4x36xf32, #tpu.memory_space<vmem>>, vector<4x1xf32>
    %23 = vector.extract_strided_slice %21 {offsets = [0, 0], sizes = [1, 256], strides = [1, 1]} : vector<8x256xf32> to vector<1x256xf32>
    %24 = vector.shape_cast %23 : vector<1x256xf32> to vector<1x256xf32>
    %25 = vector.broadcast %24 : vector<1x256xf32> to vector<4x256xf32>
    %26 = vector.broadcast %22 : vector<4x1xf32> to vector<4x256xf32>
    %27 = arith.mulf %26, %25 : vector<4x256xf32>
    %28 = arith.addf %14, %27 : vector<4x256xf32>
    %29 = vector.extract_strided_slice %21 {offsets = [4, 0], sizes = [1, 256], strides = [1, 1]} : vector<8x256xf32> to vector<1x256xf32>
    %30 = vector.shape_cast %29 : vector<1x256xf32> to vector<1x256xf32>
    %31 = vector.broadcast %30 : vector<1x256xf32> to vector<4x256xf32>
    %32 = vector.broadcast %22 : vector<4x1xf32> to vector<4x256xf32>
    %33 = arith.mulf %32, %31 : vector<4x256xf32>
    %34 = arith.addf %15, %33 : vector<4x256xf32>
    %c0_8 = arith.constant 0 : index
    %c1 = arith.constant 1 : index
    %35 = vector.load %arg1[%c0_8, %c1] : memref<4x36xf32, #tpu.memory_space<vmem>>, vector<4x1xf32>
    %36 = vector.extract_strided_slice %21 {offsets = [1, 0], sizes = [1, 256], strides = [1, 1]} : vector<8x256xf32> to vector<1x256xf32>
    %37 = vector.shape_cast %36 : vector<1x256xf32> to vector<1x256xf32>
    %38 = vector.broadcast %37 : vector<1x256xf32> to vector<4x256xf32>
    %39 = vector.broadcast %35 : vector<4x1xf32> to vector<4x256xf32>
    %40 = arith.mulf %39, %38 : vector<4x256xf32>
    %41 = arith.addf %28, %40 : vector<4x256xf32>
    %42 = vector.extract_strided_slice %21 {offsets = [5, 0], sizes = [1, 256], strides = [1, 1]} : vector<8x256xf32> to vector<1x256xf32>
    %43 = vector.shape_cast %42 : vector<1x256xf32> to vector<1x256xf32>
    %44 = vector.broadcast %43 : vector<1x256xf32> to vector<4x256xf32>
    %45 = vector.broadcast %35 : vector<4x1xf32> to vector<4x256xf32>
    %46 = arith.mulf %45, %44 : vector<4x256xf32>
    %47 = arith.addf %34, %46 : vector<4x256xf32>
    %c0_9 = arith.constant 0 : index
    %c2 = arith.constant 2 : index
    %48 = vector.load %arg1[%c0_9, %c2] : memref<4x36xf32, #tpu.memory_space<vmem>>, vector<4x1xf32>
    %49 = vector.extract_strided_slice %21 {offsets = [2, 0], sizes = [1, 256], strides = [1, 1]} : vector<8x256xf32> to vector<1x256xf32>
    %50 = vector.shape_cast %49 : vector<1x256xf32> to vector<1x256xf32>
    %51 = vector.broadcast %50 : vector<1x256xf32> to vector<4x256xf32>
    %52 = vector.broadcast %48 : vector<4x1xf32> to vector<4x256xf32>
    %53 = arith.mulf %52, %51 : vector<4x256xf32>
    %54 = arith.addf %41, %53 : vector<4x256xf32>
    %55 = vector.extract_strided_slice %21 {offsets = [6, 0], sizes = [1, 256], strides = [1, 1]} : vector<8x256xf32> to vector<1x256xf32>
    %56 = vector.shape_cast %55 : vector<1x256xf32> to vector<1x256xf32>
    %57 = vector.broadcast %56 : vector<1x256xf32> to vector<4x256xf32>
    %58 = vector.broadcast %48 : vector<4x1xf32> to vector<4x256xf32>
    %59 = arith.mulf %58, %57 : vector<4x256xf32>
    %60 = arith.addf %47, %59 : vector<4x256xf32>
    %c0_10 = arith.constant 0 : index
    %c3 = arith.constant 3 : index
    %61 = vector.load %arg1[%c0_10, %c3] : memref<4x36xf32, #tpu.memory_space<vmem>>, vector<4x1xf32>
    %62 = vector.extract_strided_slice %21 {offsets = [3, 0], sizes = [1, 256], strides = [1, 1]} : vector<8x256xf32> to vector<1x256xf32>
    %63 = vector.shape_cast %62 : vector<1x256xf32> to vector<1x256xf32>
    %64 = vector.broadcast %63 : vector<1x256xf32> to vector<4x256xf32>
    %65 = vector.broadcast %61 : vector<4x1xf32> to vector<4x256xf32>
    %66 = arith.mulf %65, %64 : vector<4x256xf32>
    %67 = arith.addf %54, %66 : vector<4x256xf32>
    %68 = vector.extract_strided_slice %21 {offsets = [7, 0], sizes = [1, 256], strides = [1, 1]} : vector<8x256xf32> to vector<1x256xf32>
    %69 = vector.shape_cast %68 : vector<1x256xf32> to vector<1x256xf32>
    %70 = vector.broadcast %69 : vector<1x256xf32> to vector<4x256xf32>
    %71 = vector.broadcast %61 : vector<4x1xf32> to vector<4x256xf32>
    %72 = arith.mulf %71, %70 : vector<4x256xf32>
    %73 = arith.addf %60, %72 : vector<4x256xf32>
    %c16_i32 = arith.constant 16 : i32
    %74 = tpu.dynamic_rotate %0 by %c16_i32 dim 1 : vector<8x256xf32>, i32 -> vector<8x256xf32>
    %cst_11 = arith.constant 0.000000e+00 : f32
    %75 = vector.shape_cast %7 : vector<1x256xi1> to vector<1x256xi1>
    %76 = vector.broadcast %75 : vector<1x256xi1> to vector<8x256xi1>
    %77 = vector.broadcast %cst_11 : f32 to vector<8x256xf32>
    %78 = arith.select %76, %74, %77 : vector<8x256xi1>, vector<8x256xf32>
    %c0_12 = arith.constant 0 : index
    %c4 = arith.constant 4 : index
    %79 = vector.load %arg1[%c0_12, %c4] : memref<4x36xf32, #tpu.memory_space<vmem>>, vector<4x1xf32>
    %80 = vector.extract_strided_slice %78 {offsets = [0, 0], sizes = [1, 256], strides = [1, 1]} : vector<8x256xf32> to vector<1x256xf32>
    %81 = vector.shape_cast %80 : vector<1x256xf32> to vector<1x256xf32>
    %82 = vector.broadcast %81 : vector<1x256xf32> to vector<4x256xf32>
    %83 = vector.broadcast %79 : vector<4x1xf32> to vector<4x256xf32>
    %84 = arith.mulf %83, %82 : vector<4x256xf32>
    %85 = arith.addf %67, %84 : vector<4x256xf32>
    %86 = vector.extract_strided_slice %78 {offsets = [4, 0], sizes = [1, 256], strides = [1, 1]} : vector<8x256xf32> to vector<1x256xf32>
    %87 = vector.shape_cast %86 : vector<1x256xf32> to vector<1x256xf32>
    %88 = vector.broadcast %87 : vector<1x256xf32> to vector<4x256xf32>
    %89 = vector.broadcast %79 : vector<4x1xf32> to vector<4x256xf32>
    %90 = arith.mulf %89, %88 : vector<4x256xf32>
    %91 = arith.addf %73, %90 : vector<4x256xf32>
    %c0_13 = arith.constant 0 : index
    %c5 = arith.constant 5 : index
    %92 = vector.load %arg1[%c0_13, %c5] : memref<4x36xf32, #tpu.memory_space<vmem>>, vector<4x1xf32>
    %93 = vector.extract_strided_slice %78 {offsets = [1, 0], sizes = [1, 256], strides = [1, 1]} : vector<8x256xf32> to vector<1x256xf32>
    %94 = vector.shape_cast %93 : vector<1x256xf32> to vector<1x256xf32>
    %95 = vector.broadcast %94 : vector<1x256xf32> to vector<4x256xf32>
    %96 = vector.broadcast %92 : vector<4x1xf32> to vector<4x256xf32>
    %97 = arith.mulf %96, %95 : vector<4x256xf32>
    %98 = arith.addf %85, %97 : vector<4x256xf32>
    %99 = vector.extract_strided_slice %78 {offsets = [5, 0], sizes = [1, 256], strides = [1, 1]} : vector<8x256xf32> to vector<1x256xf32>
    %100 = vector.shape_cast %99 : vector<1x256xf32> to vector<1x256xf32>
    %101 = vector.broadcast %100 : vector<1x256xf32> to vector<4x256xf32>
    %102 = vector.broadcast %92 : vector<4x1xf32> to vector<4x256xf32>
    %103 = arith.mulf %102, %101 : vector<4x256xf32>
    %104 = arith.addf %91, %103 : vector<4x256xf32>
    %c0_14 = arith.constant 0 : index
    %c6 = arith.constant 6 : index
    %105 = vector.load %arg1[%c0_14, %c6] : memref<4x36xf32, #tpu.memory_space<vmem>>, vector<4x1xf32>
    %106 = vector.extract_strided_slice %78 {offsets = [2, 0], sizes = [1, 256], strides = [1, 1]} : vector<8x256xf32> to vector<1x256xf32>
    %107 = vector.shape_cast %106 : vector<1x256xf32> to vector<1x256xf32>
    %108 = vector.broadcast %107 : vector<1x256xf32> to vector<4x256xf32>
    %109 = vector.broadcast %105 : vector<4x1xf32> to vector<4x256xf32>
    %110 = arith.mulf %109, %108 : vector<4x256xf32>
    %111 = arith.addf %98, %110 : vector<4x256xf32>
    %112 = vector.extract_strided_slice %78 {offsets = [6, 0], sizes = [1, 256], strides = [1, 1]} : vector<8x256xf32> to vector<1x256xf32>
    %113 = vector.shape_cast %112 : vector<1x256xf32> to vector<1x256xf32>
    %114 = vector.broadcast %113 : vector<1x256xf32> to vector<4x256xf32>
    %115 = vector.broadcast %105 : vector<4x1xf32> to vector<4x256xf32>
    %116 = arith.mulf %115, %114 : vector<4x256xf32>
    %117 = arith.addf %104, %116 : vector<4x256xf32>
    %c0_15 = arith.constant 0 : index
    %c7 = arith.constant 7 : index
    %118 = vector.load %arg1[%c0_15, %c7] : memref<4x36xf32, #tpu.memory_space<vmem>>, vector<4x1xf32>
    %119 = vector.extract_strided_slice %78 {offsets = [3, 0], sizes = [1, 256], strides = [1, 1]} : vector<8x256xf32> to vector<1x256xf32>
    %120 = vector.shape_cast %119 : vector<1x256xf32> to vector<1x256xf32>
    %121 = vector.broadcast %120 : vector<1x256xf32> to vector<4x256xf32>
    %122 = vector.broadcast %118 : vector<4x1xf32> to vector<4x256xf32>
    %123 = arith.mulf %122, %121 : vector<4x256xf32>
    %124 = arith.addf %111, %123 : vector<4x256xf32>
    %125 = vector.extract_strided_slice %78 {offsets = [7, 0], sizes = [1, 256], strides = [1, 1]} : vector<8x256xf32> to vector<1x256xf32>
    %126 = vector.shape_cast %125 : vector<1x256xf32> to vector<1x256xf32>
    %127 = vector.broadcast %126 : vector<1x256xf32> to vector<4x256xf32>
    %128 = vector.broadcast %118 : vector<4x1xf32> to vector<4x256xf32>
    %129 = arith.mulf %128, %127 : vector<4x256xf32>
    %130 = arith.addf %117, %129 : vector<4x256xf32>
    %c15_i32_16 = arith.constant 15 : i32
    %131 = tpu.dynamic_rotate %0 by %c15_i32_16 dim 1 : vector<8x256xf32>, i32 -> vector<8x256xf32>
    %132 = arith.andi %7, %13 : vector<1x256xi1>
    %cst_17 = arith.constant 0.000000e+00 : f32
    %133 = vector.shape_cast %132 : vector<1x256xi1> to vector<1x256xi1>
    %134 = vector.broadcast %133 : vector<1x256xi1> to vector<8x256xi1>
    %135 = vector.broadcast %cst_17 : f32 to vector<8x256xf32>
    %136 = arith.select %134, %131, %135 : vector<8x256xi1>, vector<8x256xf32>
    %c0_18 = arith.constant 0 : index
    %c8 = arith.constant 8 : index
    %137 = vector.load %arg1[%c0_18, %c8] : memref<4x36xf32, #tpu.memory_space<vmem>>, vector<4x1xf32>
    %138 = vector.extract_strided_slice %136 {offsets = [0, 0], sizes = [1, 256], strides = [1, 1]} : vector<8x256xf32> to vector<1x256xf32>
    %139 = vector.shape_cast %138 : vector<1x256xf32> to vector<1x256xf32>
    %140 = vector.broadcast %139 : vector<1x256xf32> to vector<4x256xf32>
    %141 = vector.broadcast %137 : vector<4x1xf32> to vector<4x256xf32>
    %142 = arith.mulf %141, %140 : vector<4x256xf32>
    %143 = arith.addf %124, %142 : vector<4x256xf32>
    %144 = vector.extract_strided_slice %136 {offsets = [4, 0], sizes = [1, 256], strides = [1, 1]} : vector<8x256xf32> to vector<1x256xf32>
    %145 = vector.shape_cast %144 : vector<1x256xf32> to vector<1x256xf32>
    %146 = vector.broadcast %145 : vector<1x256xf32> to vector<4x256xf32>
    %147 = vector.broadcast %137 : vector<4x1xf32> to vector<4x256xf32>
    %148 = arith.mulf %147, %146 : vector<4x256xf32>
    %149 = arith.addf %130, %148 : vector<4x256xf32>
    %c0_19 = arith.constant 0 : index
    %c9 = arith.constant 9 : index
    %150 = vector.load %arg1[%c0_19, %c9] : memref<4x36xf32, #tpu.memory_space<vmem>>, vector<4x1xf32>
    %151 = vector.extract_strided_slice %136 {offsets = [1, 0], sizes = [1, 256], strides = [1, 1]} : vector<8x256xf32> to vector<1x256xf32>
    %152 = vector.shape_cast %151 : vector<1x256xf32> to vector<1x256xf32>
    %153 = vector.broadcast %152 : vector<1x256xf32> to vector<4x256xf32>
    %154 = vector.broadcast %150 : vector<4x1xf32> to vector<4x256xf32>
    %155 = arith.mulf %154, %153 : vector<4x256xf32>
    %156 = arith.addf %143, %155 : vector<4x256xf32>
    %157 = vector.extract_strided_slice %136 {offsets = [5, 0], sizes = [1, 256], strides = [1, 1]} : vector<8x256xf32> to vector<1x256xf32>
    %158 = vector.shape_cast %157 : vector<1x256xf32> to vector<1x256xf32>
    %159 = vector.broadcast %158 : vector<1x256xf32> to vector<4x256xf32>
    %160 = vector.broadcast %150 : vector<4x1xf32> to vector<4x256xf32>
    %161 = arith.mulf %160, %159 : vector<4x256xf32>
    %162 = arith.addf %149, %161 : vector<4x256xf32>
    %c0_20 = arith.constant 0 : index
    %c10 = arith.constant 10 : index
    %163 = vector.load %arg1[%c0_20, %c10] : memref<4x36xf32, #tpu.memory_space<vmem>>, vector<4x1xf32>
    %164 = vector.extract_strided_slice %136 {offsets = [2, 0], sizes = [1, 256], strides = [1, 1]} : vector<8x256xf32> to vector<1x256xf32>
    %165 = vector.shape_cast %164 : vector<1x256xf32> to vector<1x256xf32>
    %166 = vector.broadcast %165 : vector<1x256xf32> to vector<4x256xf32>
    %167 = vector.broadcast %163 : vector<4x1xf32> to vector<4x256xf32>
    %168 = arith.mulf %167, %166 : vector<4x256xf32>
    %169 = arith.addf %156, %168 : vector<4x256xf32>
    %170 = vector.extract_strided_slice %136 {offsets = [6, 0], sizes = [1, 256], strides = [1, 1]} : vector<8x256xf32> to vector<1x256xf32>
    %171 = vector.shape_cast %170 : vector<1x256xf32> to vector<1x256xf32>
    %172 = vector.broadcast %171 : vector<1x256xf32> to vector<4x256xf32>
    %173 = vector.broadcast %163 : vector<4x1xf32> to vector<4x256xf32>
    %174 = arith.mulf %173, %172 : vector<4x256xf32>
    %175 = arith.addf %162, %174 : vector<4x256xf32>
    %c0_21 = arith.constant 0 : index
    %c11 = arith.constant 11 : index
    %176 = vector.load %arg1[%c0_21, %c11] : memref<4x36xf32, #tpu.memory_space<vmem>>, vector<4x1xf32>
    %177 = vector.extract_strided_slice %136 {offsets = [3, 0], sizes = [1, 256], strides = [1, 1]} : vector<8x256xf32> to vector<1x256xf32>
    %178 = vector.shape_cast %177 : vector<1x256xf32> to vector<1x256xf32>
    %179 = vector.broadcast %178 : vector<1x256xf32> to vector<4x256xf32>
    %180 = vector.broadcast %176 : vector<4x1xf32> to vector<4x256xf32>
    %181 = arith.mulf %180, %179 : vector<4x256xf32>
    %182 = arith.addf %169, %181 : vector<4x256xf32>
    %183 = vector.extract_strided_slice %136 {offsets = [7, 0], sizes = [1, 256], strides = [1, 1]} : vector<8x256xf32> to vector<1x256xf32>
    %184 = vector.shape_cast %183 : vector<1x256xf32> to vector<1x256xf32>
    %185 = vector.broadcast %184 : vector<1x256xf32> to vector<4x256xf32>
    %186 = vector.broadcast %176 : vector<4x1xf32> to vector<4x256xf32>
    %187 = arith.mulf %186, %185 : vector<4x256xf32>
    %188 = arith.addf %175, %187 : vector<4x256xf32>
    %c1_i32_22 = arith.constant 1 : i32
    %189 = tpu.dynamic_rotate %0 by %c1_i32_22 dim 1 : vector<8x256xf32>, i32 -> vector<8x256xf32>
    %cst_23 = arith.constant 0.000000e+00 : f32
    %190 = vector.shape_cast %11 : vector<1x256xi1> to vector<1x256xi1>
    %191 = vector.broadcast %190 : vector<1x256xi1> to vector<8x256xi1>
    %192 = vector.broadcast %cst_23 : f32 to vector<8x256xf32>
    %193 = arith.select %191, %189, %192 : vector<8x256xi1>, vector<8x256xf32>
    %c0_24 = arith.constant 0 : index
    %c12 = arith.constant 12 : index
    %194 = vector.load %arg1[%c0_24, %c12] : memref<4x36xf32, #tpu.memory_space<vmem>>, vector<4x1xf32>
    %195 = vector.extract_strided_slice %193 {offsets = [0, 0], sizes = [1, 256], strides = [1, 1]} : vector<8x256xf32> to vector<1x256xf32>
    %196 = vector.shape_cast %195 : vector<1x256xf32> to vector<1x256xf32>
    %197 = vector.broadcast %196 : vector<1x256xf32> to vector<4x256xf32>
    %198 = vector.broadcast %194 : vector<4x1xf32> to vector<4x256xf32>
    %199 = arith.mulf %198, %197 : vector<4x256xf32>
    %200 = arith.addf %182, %199 : vector<4x256xf32>
    %201 = vector.extract_strided_slice %193 {offsets = [4, 0], sizes = [1, 256], strides = [1, 1]} : vector<8x256xf32> to vector<1x256xf32>
    %202 = vector.shape_cast %201 : vector<1x256xf32> to vector<1x256xf32>
    %203 = vector.broadcast %202 : vector<1x256xf32> to vector<4x256xf32>
    %204 = vector.broadcast %194 : vector<4x1xf32> to vector<4x256xf32>
    %205 = arith.mulf %204, %203 : vector<4x256xf32>
    %206 = arith.addf %188, %205 : vector<4x256xf32>
    %c0_25 = arith.constant 0 : index
    %c13 = arith.constant 13 : index
    %207 = vector.load %arg1[%c0_25, %c13] : memref<4x36xf32, #tpu.memory_space<vmem>>, vector<4x1xf32>
    %208 = vector.extract_strided_slice %193 {offsets = [1, 0], sizes = [1, 256], strides = [1, 1]} : vector<8x256xf32> to vector<1x256xf32>
    %209 = vector.shape_cast %208 : vector<1x256xf32> to vector<1x256xf32>
    %210 = vector.broadcast %209 : vector<1x256xf32> to vector<4x256xf32>
    %211 = vector.broadcast %207 : vector<4x1xf32> to vector<4x256xf32>
    %212 = arith.mulf %211, %210 : vector<4x256xf32>
    %213 = arith.addf %200, %212 : vector<4x256xf32>
    %214 = vector.extract_strided_slice %193 {offsets = [5, 0], sizes = [1, 256], strides = [1, 1]} : vector<8x256xf32> to vector<1x256xf32>
    %215 = vector.shape_cast %214 : vector<1x256xf32> to vector<1x256xf32>
    %216 = vector.broadcast %215 : vector<1x256xf32> to vector<4x256xf32>
    %217 = vector.broadcast %207 : vector<4x1xf32> to vector<4x256xf32>
    %218 = arith.mulf %217, %216 : vector<4x256xf32>
    %219 = arith.addf %206, %218 : vector<4x256xf32>
    %c0_26 = arith.constant 0 : index
    %c14 = arith.constant 14 : index
    %220 = vector.load %arg1[%c0_26, %c14] : memref<4x36xf32, #tpu.memory_space<vmem>>, vector<4x1xf32>
    %221 = vector.extract_strided_slice %193 {offsets = [2, 0], sizes = [1, 256], strides = [1, 1]} : vector<8x256xf32> to vector<1x256xf32>
    %222 = vector.shape_cast %221 : vector<1x256xf32> to vector<1x256xf32>
    %223 = vector.broadcast %222 : vector<1x256xf32> to vector<4x256xf32>
    %224 = vector.broadcast %220 : vector<4x1xf32> to vector<4x256xf32>
    %225 = arith.mulf %224, %223 : vector<4x256xf32>
    %226 = arith.addf %213, %225 : vector<4x256xf32>
    %227 = vector.extract_strided_slice %193 {offsets = [6, 0], sizes = [1, 256], strides = [1, 1]} : vector<8x256xf32> to vector<1x256xf32>
    %228 = vector.shape_cast %227 : vector<1x256xf32> to vector<1x256xf32>
    %229 = vector.broadcast %228 : vector<1x256xf32> to vector<4x256xf32>
    %230 = vector.broadcast %220 : vector<4x1xf32> to vector<4x256xf32>
    %231 = arith.mulf %230, %229 : vector<4x256xf32>
    %232 = arith.addf %219, %231 : vector<4x256xf32>
    %c0_27 = arith.constant 0 : index
    %c15 = arith.constant 15 : index
    %233 = vector.load %arg1[%c0_27, %c15] : memref<4x36xf32, #tpu.memory_space<vmem>>, vector<4x1xf32>
    %234 = vector.extract_strided_slice %193 {offsets = [3, 0], sizes = [1, 256], strides = [1, 1]} : vector<8x256xf32> to vector<1x256xf32>
    %235 = vector.shape_cast %234 : vector<1x256xf32> to vector<1x256xf32>
    %236 = vector.broadcast %235 : vector<1x256xf32> to vector<4x256xf32>
    %237 = vector.broadcast %233 : vector<4x1xf32> to vector<4x256xf32>
    %238 = arith.mulf %237, %236 : vector<4x256xf32>
    %239 = arith.addf %226, %238 : vector<4x256xf32>
    %240 = vector.extract_strided_slice %193 {offsets = [7, 0], sizes = [1, 256], strides = [1, 1]} : vector<8x256xf32> to vector<1x256xf32>
    %241 = vector.shape_cast %240 : vector<1x256xf32> to vector<1x256xf32>
    %242 = vector.broadcast %241 : vector<1x256xf32> to vector<4x256xf32>
    %243 = vector.broadcast %233 : vector<4x1xf32> to vector<4x256xf32>
    %244 = arith.mulf %243, %242 : vector<4x256xf32>
    %245 = arith.addf %232, %244 : vector<4x256xf32>
    %c0_28 = arith.constant 0 : index
    %c16 = arith.constant 16 : index
    %246 = vector.load %arg1[%c0_28, %c16] : memref<4x36xf32, #tpu.memory_space<vmem>>, vector<4x1xf32>
    %247 = vector.extract_strided_slice %0 {offsets = [0, 0], sizes = [1, 256], strides = [1, 1]} : vector<8x256xf32> to vector<1x256xf32>
    %248 = vector.shape_cast %247 : vector<1x256xf32> to vector<1x256xf32>
    %249 = vector.broadcast %248 : vector<1x256xf32> to vector<4x256xf32>
    %250 = vector.broadcast %246 : vector<4x1xf32> to vector<4x256xf32>
    %251 = arith.mulf %250, %249 : vector<4x256xf32>
    %252 = arith.addf %239, %251 : vector<4x256xf32>
    %253 = vector.extract_strided_slice %0 {offsets = [4, 0], sizes = [1, 256], strides = [1, 1]} : vector<8x256xf32> to vector<1x256xf32>
    %254 = vector.shape_cast %253 : vector<1x256xf32> to vector<1x256xf32>
    %255 = vector.broadcast %254 : vector<1x256xf32> to vector<4x256xf32>
    %256 = vector.broadcast %246 : vector<4x1xf32> to vector<4x256xf32>
    %257 = arith.mulf %256, %255 : vector<4x256xf32>
    %258 = arith.addf %245, %257 : vector<4x256xf32>
    %c0_29 = arith.constant 0 : index
    %c17 = arith.constant 17 : index
    %259 = vector.load %arg1[%c0_29, %c17] : memref<4x36xf32, #tpu.memory_space<vmem>>, vector<4x1xf32>
    %260 = vector.extract_strided_slice %0 {offsets = [1, 0], sizes = [1, 256], strides = [1, 1]} : vector<8x256xf32> to vector<1x256xf32>
    %261 = vector.shape_cast %260 : vector<1x256xf32> to vector<1x256xf32>
    %262 = vector.broadcast %261 : vector<1x256xf32> to vector<4x256xf32>
    %263 = vector.broadcast %259 : vector<4x1xf32> to vector<4x256xf32>
    %264 = arith.mulf %263, %262 : vector<4x256xf32>
    %265 = arith.addf %252, %264 : vector<4x256xf32>
    %266 = vector.extract_strided_slice %0 {offsets = [5, 0], sizes = [1, 256], strides = [1, 1]} : vector<8x256xf32> to vector<1x256xf32>
    %267 = vector.shape_cast %266 : vector<1x256xf32> to vector<1x256xf32>
    %268 = vector.broadcast %267 : vector<1x256xf32> to vector<4x256xf32>
    %269 = vector.broadcast %259 : vector<4x1xf32> to vector<4x256xf32>
    %270 = arith.mulf %269, %268 : vector<4x256xf32>
    %271 = arith.addf %258, %270 : vector<4x256xf32>
    %c0_30 = arith.constant 0 : index
    %c18 = arith.constant 18 : index
    %272 = vector.load %arg1[%c0_30, %c18] : memref<4x36xf32, #tpu.memory_space<vmem>>, vector<4x1xf32>
    %273 = vector.extract_strided_slice %0 {offsets = [2, 0], sizes = [1, 256], strides = [1, 1]} : vector<8x256xf32> to vector<1x256xf32>
    %274 = vector.shape_cast %273 : vector<1x256xf32> to vector<1x256xf32>
    %275 = vector.broadcast %274 : vector<1x256xf32> to vector<4x256xf32>
    %276 = vector.broadcast %272 : vector<4x1xf32> to vector<4x256xf32>
    %277 = arith.mulf %276, %275 : vector<4x256xf32>
    %278 = arith.addf %265, %277 : vector<4x256xf32>
    %279 = vector.extract_strided_slice %0 {offsets = [6, 0], sizes = [1, 256], strides = [1, 1]} : vector<8x256xf32> to vector<1x256xf32>
    %280 = vector.shape_cast %279 : vector<1x256xf32> to vector<1x256xf32>
    %281 = vector.broadcast %280 : vector<1x256xf32> to vector<4x256xf32>
    %282 = vector.broadcast %272 : vector<4x1xf32> to vector<4x256xf32>
    %283 = arith.mulf %282, %281 : vector<4x256xf32>
    %284 = arith.addf %271, %283 : vector<4x256xf32>
    %c0_31 = arith.constant 0 : index
    %c19 = arith.constant 19 : index
    %285 = vector.load %arg1[%c0_31, %c19] : memref<4x36xf32, #tpu.memory_space<vmem>>, vector<4x1xf32>
    %286 = vector.extract_strided_slice %0 {offsets = [3, 0], sizes = [1, 256], strides = [1, 1]} : vector<8x256xf32> to vector<1x256xf32>
    %287 = vector.shape_cast %286 : vector<1x256xf32> to vector<1x256xf32>
    %288 = vector.broadcast %287 : vector<1x256xf32> to vector<4x256xf32>
    %289 = vector.broadcast %285 : vector<4x1xf32> to vector<4x256xf32>
    %290 = arith.mulf %289, %288 : vector<4x256xf32>
    %291 = arith.addf %278, %290 : vector<4x256xf32>
    %292 = vector.extract_strided_slice %0 {offsets = [7, 0], sizes = [1, 256], strides = [1, 1]} : vector<8x256xf32> to vector<1x256xf32>
    %293 = vector.shape_cast %292 : vector<1x256xf32> to vector<1x256xf32>
    %294 = vector.broadcast %293 : vector<1x256xf32> to vector<4x256xf32>
    %295 = vector.broadcast %285 : vector<4x1xf32> to vector<4x256xf32>
    %296 = arith.mulf %295, %294 : vector<4x256xf32>
    %297 = arith.addf %284, %296 : vector<4x256xf32>
    %c255_i32 = arith.constant 255 : i32
    %298 = tpu.dynamic_rotate %0 by %c255_i32 dim 1 : vector<8x256xf32>, i32 -> vector<8x256xf32>
    %cst_32 = arith.constant 0.000000e+00 : f32
    %299 = vector.shape_cast %13 : vector<1x256xi1> to vector<1x256xi1>
    %300 = vector.broadcast %299 : vector<1x256xi1> to vector<8x256xi1>
    %301 = vector.broadcast %cst_32 : f32 to vector<8x256xf32>
    %302 = arith.select %300, %298, %301 : vector<8x256xi1>, vector<8x256xf32>
    %c0_33 = arith.constant 0 : index
    %c20 = arith.constant 20 : index
    %303 = vector.load %arg1[%c0_33, %c20] : memref<4x36xf32, #tpu.memory_space<vmem>>, vector<4x1xf32>
    %304 = vector.extract_strided_slice %302 {offsets = [0, 0], sizes = [1, 256], strides = [1, 1]} : vector<8x256xf32> to vector<1x256xf32>
    %305 = vector.shape_cast %304 : vector<1x256xf32> to vector<1x256xf32>
    %306 = vector.broadcast %305 : vector<1x256xf32> to vector<4x256xf32>
    %307 = vector.broadcast %303 : vector<4x1xf32> to vector<4x256xf32>
    %308 = arith.mulf %307, %306 : vector<4x256xf32>
    %309 = arith.addf %291, %308 : vector<4x256xf32>
    %310 = vector.extract_strided_slice %302 {offsets = [4, 0], sizes = [1, 256], strides = [1, 1]} : vector<8x256xf32> to vector<1x256xf32>
    %311 = vector.shape_cast %310 : vector<1x256xf32> to vector<1x256xf32>
    %312 = vector.broadcast %311 : vector<1x256xf32> to vector<4x256xf32>
    %313 = vector.broadcast %303 : vector<4x1xf32> to vector<4x256xf32>
    %314 = arith.mulf %313, %312 : vector<4x256xf32>
    %315 = arith.addf %297, %314 : vector<4x256xf32>
    %c0_34 = arith.constant 0 : index
    %c21 = arith.constant 21 : index
    %316 = vector.load %arg1[%c0_34, %c21] : memref<4x36xf32, #tpu.memory_space<vmem>>, vector<4x1xf32>
    %317 = vector.extract_strided_slice %302 {offsets = [1, 0], sizes = [1, 256], strides = [1, 1]} : vector<8x256xf32> to vector<1x256xf32>
    %318 = vector.shape_cast %317 : vector<1x256xf32> to vector<1x256xf32>
    %319 = vector.broadcast %318 : vector<1x256xf32> to vector<4x256xf32>
    %320 = vector.broadcast %316 : vector<4x1xf32> to vector<4x256xf32>
    %321 = arith.mulf %320, %319 : vector<4x256xf32>
    %322 = arith.addf %309, %321 : vector<4x256xf32>
    %323 = vector.extract_strided_slice %302 {offsets = [5, 0], sizes = [1, 256], strides = [1, 1]} : vector<8x256xf32> to vector<1x256xf32>
    %324 = vector.shape_cast %323 : vector<1x256xf32> to vector<1x256xf32>
    %325 = vector.broadcast %324 : vector<1x256xf32> to vector<4x256xf32>
    %326 = vector.broadcast %316 : vector<4x1xf32> to vector<4x256xf32>
    %327 = arith.mulf %326, %325 : vector<4x256xf32>
    %328 = arith.addf %315, %327 : vector<4x256xf32>
    %c0_35 = arith.constant 0 : index
    %c22 = arith.constant 22 : index
    %329 = vector.load %arg1[%c0_35, %c22] : memref<4x36xf32, #tpu.memory_space<vmem>>, vector<4x1xf32>
    %330 = vector.extract_strided_slice %302 {offsets = [2, 0], sizes = [1, 256], strides = [1, 1]} : vector<8x256xf32> to vector<1x256xf32>
    %331 = vector.shape_cast %330 : vector<1x256xf32> to vector<1x256xf32>
    %332 = vector.broadcast %331 : vector<1x256xf32> to vector<4x256xf32>
    %333 = vector.broadcast %329 : vector<4x1xf32> to vector<4x256xf32>
    %334 = arith.mulf %333, %332 : vector<4x256xf32>
    %335 = arith.addf %322, %334 : vector<4x256xf32>
    %336 = vector.extract_strided_slice %302 {offsets = [6, 0], sizes = [1, 256], strides = [1, 1]} : vector<8x256xf32> to vector<1x256xf32>
    %337 = vector.shape_cast %336 : vector<1x256xf32> to vector<1x256xf32>
    %338 = vector.broadcast %337 : vector<1x256xf32> to vector<4x256xf32>
    %339 = vector.broadcast %329 : vector<4x1xf32> to vector<4x256xf32>
    %340 = arith.mulf %339, %338 : vector<4x256xf32>
    %341 = arith.addf %328, %340 : vector<4x256xf32>
    %c0_36 = arith.constant 0 : index
    %c23 = arith.constant 23 : index
    %342 = vector.load %arg1[%c0_36, %c23] : memref<4x36xf32, #tpu.memory_space<vmem>>, vector<4x1xf32>
    %343 = vector.extract_strided_slice %302 {offsets = [3, 0], sizes = [1, 256], strides = [1, 1]} : vector<8x256xf32> to vector<1x256xf32>
    %344 = vector.shape_cast %343 : vector<1x256xf32> to vector<1x256xf32>
    %345 = vector.broadcast %344 : vector<1x256xf32> to vector<4x256xf32>
    %346 = vector.broadcast %342 : vector<4x1xf32> to vector<4x256xf32>
    %347 = arith.mulf %346, %345 : vector<4x256xf32>
    %348 = arith.addf %335, %347 : vector<4x256xf32>
    %349 = vector.extract_strided_slice %302 {offsets = [7, 0], sizes = [1, 256], strides = [1, 1]} : vector<8x256xf32> to vector<1x256xf32>
    %350 = vector.shape_cast %349 : vector<1x256xf32> to vector<1x256xf32>
    %351 = vector.broadcast %350 : vector<1x256xf32> to vector<4x256xf32>
    %352 = vector.broadcast %342 : vector<4x1xf32> to vector<4x256xf32>
    %353 = arith.mulf %352, %351 : vector<4x256xf32>
    %354 = arith.addf %341, %353 : vector<4x256xf32>
    %c241_i32 = arith.constant 241 : i32
    %355 = tpu.dynamic_rotate %0 by %c241_i32 dim 1 : vector<8x256xf32>, i32 -> vector<8x256xf32>
    %356 = arith.andi %9, %11 : vector<1x256xi1>
    %cst_37 = arith.constant 0.000000e+00 : f32
    %357 = vector.shape_cast %356 : vector<1x256xi1> to vector<1x256xi1>
    %358 = vector.broadcast %357 : vector<1x256xi1> to vector<8x256xi1>
    %359 = vector.broadcast %cst_37 : f32 to vector<8x256xf32>
    %360 = arith.select %358, %355, %359 : vector<8x256xi1>, vector<8x256xf32>
    %c0_38 = arith.constant 0 : index
    %c24 = arith.constant 24 : index
    %361 = vector.load %arg1[%c0_38, %c24] : memref<4x36xf32, #tpu.memory_space<vmem>>, vector<4x1xf32>
    %362 = vector.extract_strided_slice %360 {offsets = [0, 0], sizes = [1, 256], strides = [1, 1]} : vector<8x256xf32> to vector<1x256xf32>
    %363 = vector.shape_cast %362 : vector<1x256xf32> to vector<1x256xf32>
    %364 = vector.broadcast %363 : vector<1x256xf32> to vector<4x256xf32>
    %365 = vector.broadcast %361 : vector<4x1xf32> to vector<4x256xf32>
    %366 = arith.mulf %365, %364 : vector<4x256xf32>
    %367 = arith.addf %348, %366 : vector<4x256xf32>
    %368 = vector.extract_strided_slice %360 {offsets = [4, 0], sizes = [1, 256], strides = [1, 1]} : vector<8x256xf32> to vector<1x256xf32>
    %369 = vector.shape_cast %368 : vector<1x256xf32> to vector<1x256xf32>
    %370 = vector.broadcast %369 : vector<1x256xf32> to vector<4x256xf32>
    %371 = vector.broadcast %361 : vector<4x1xf32> to vector<4x256xf32>
    %372 = arith.mulf %371, %370 : vector<4x256xf32>
    %373 = arith.addf %354, %372 : vector<4x256xf32>
    %c0_39 = arith.constant 0 : index
    %c25 = arith.constant 25 : index
    %374 = vector.load %arg1[%c0_39, %c25] : memref<4x36xf32, #tpu.memory_space<vmem>>, vector<4x1xf32>
    %375 = vector.extract_strided_slice %360 {offsets = [1, 0], sizes = [1, 256], strides = [1, 1]} : vector<8x256xf32> to vector<1x256xf32>
    %376 = vector.shape_cast %375 : vector<1x256xf32> to vector<1x256xf32>
    %377 = vector.broadcast %376 : vector<1x256xf32> to vector<4x256xf32>
    %378 = vector.broadcast %374 : vector<4x1xf32> to vector<4x256xf32>
    %379 = arith.mulf %378, %377 : vector<4x256xf32>
    %380 = arith.addf %367, %379 : vector<4x256xf32>
    %381 = vector.extract_strided_slice %360 {offsets = [5, 0], sizes = [1, 256], strides = [1, 1]} : vector<8x256xf32> to vector<1x256xf32>
    %382 = vector.shape_cast %381 : vector<1x256xf32> to vector<1x256xf32>
    %383 = vector.broadcast %382 : vector<1x256xf32> to vector<4x256xf32>
    %384 = vector.broadcast %374 : vector<4x1xf32> to vector<4x256xf32>
    %385 = arith.mulf %384, %383 : vector<4x256xf32>
    %386 = arith.addf %373, %385 : vector<4x256xf32>
    %c0_40 = arith.constant 0 : index
    %c26 = arith.constant 26 : index
    %387 = vector.load %arg1[%c0_40, %c26] : memref<4x36xf32, #tpu.memory_space<vmem>>, vector<4x1xf32>
    %388 = vector.extract_strided_slice %360 {offsets = [2, 0], sizes = [1, 256], strides = [1, 1]} : vector<8x256xf32> to vector<1x256xf32>
    %389 = vector.shape_cast %388 : vector<1x256xf32> to vector<1x256xf32>
    %390 = vector.broadcast %389 : vector<1x256xf32> to vector<4x256xf32>
    %391 = vector.broadcast %387 : vector<4x1xf32> to vector<4x256xf32>
    %392 = arith.mulf %391, %390 : vector<4x256xf32>
    %393 = arith.addf %380, %392 : vector<4x256xf32>
    %394 = vector.extract_strided_slice %360 {offsets = [6, 0], sizes = [1, 256], strides = [1, 1]} : vector<8x256xf32> to vector<1x256xf32>
    %395 = vector.shape_cast %394 : vector<1x256xf32> to vector<1x256xf32>
    %396 = vector.broadcast %395 : vector<1x256xf32> to vector<4x256xf32>
    %397 = vector.broadcast %387 : vector<4x1xf32> to vector<4x256xf32>
    %398 = arith.mulf %397, %396 : vector<4x256xf32>
    %399 = arith.addf %386, %398 : vector<4x256xf32>
    %c0_41 = arith.constant 0 : index
    %c27 = arith.constant 27 : index
    %400 = vector.load %arg1[%c0_41, %c27] : memref<4x36xf32, #tpu.memory_space<vmem>>, vector<4x1xf32>
    %401 = vector.extract_strided_slice %360 {offsets = [3, 0], sizes = [1, 256], strides = [1, 1]} : vector<8x256xf32> to vector<1x256xf32>
    %402 = vector.shape_cast %401 : vector<1x256xf32> to vector<1x256xf32>
    %403 = vector.broadcast %402 : vector<1x256xf32> to vector<4x256xf32>
    %404 = vector.broadcast %400 : vector<4x1xf32> to vector<4x256xf32>
    %405 = arith.mulf %404, %403 : vector<4x256xf32>
    %406 = arith.addf %393, %405 : vector<4x256xf32>
    %407 = vector.extract_strided_slice %360 {offsets = [7, 0], sizes = [1, 256], strides = [1, 1]} : vector<8x256xf32> to vector<1x256xf32>
    %408 = vector.shape_cast %407 : vector<1x256xf32> to vector<1x256xf32>
    %409 = vector.broadcast %408 : vector<1x256xf32> to vector<4x256xf32>
    %410 = vector.broadcast %400 : vector<4x1xf32> to vector<4x256xf32>
    %411 = arith.mulf %410, %409 : vector<4x256xf32>
    %412 = arith.addf %399, %411 : vector<4x256xf32>
    %c240_i32 = arith.constant 240 : i32
    %413 = tpu.dynamic_rotate %0 by %c240_i32 dim 1 : vector<8x256xf32>, i32 -> vector<8x256xf32>
    %cst_42 = arith.constant 0.000000e+00 : f32
    %414 = vector.shape_cast %9 : vector<1x256xi1> to vector<1x256xi1>
    %415 = vector.broadcast %414 : vector<1x256xi1> to vector<8x256xi1>
    %416 = vector.broadcast %cst_42 : f32 to vector<8x256xf32>
    %417 = arith.select %415, %413, %416 : vector<8x256xi1>, vector<8x256xf32>
    %c0_43 = arith.constant 0 : index
    %c28 = arith.constant 28 : index
    %418 = vector.load %arg1[%c0_43, %c28] : memref<4x36xf32, #tpu.memory_space<vmem>>, vector<4x1xf32>
    %419 = vector.extract_strided_slice %417 {offsets = [0, 0], sizes = [1, 256], strides = [1, 1]} : vector<8x256xf32> to vector<1x256xf32>
    %420 = vector.shape_cast %419 : vector<1x256xf32> to vector<1x256xf32>
    %421 = vector.broadcast %420 : vector<1x256xf32> to vector<4x256xf32>
    %422 = vector.broadcast %418 : vector<4x1xf32> to vector<4x256xf32>
    %423 = arith.mulf %422, %421 : vector<4x256xf32>
    %424 = arith.addf %406, %423 : vector<4x256xf32>
    %425 = vector.extract_strided_slice %417 {offsets = [4, 0], sizes = [1, 256], strides = [1, 1]} : vector<8x256xf32> to vector<1x256xf32>
    %426 = vector.shape_cast %425 : vector<1x256xf32> to vector<1x256xf32>
    %427 = vector.broadcast %426 : vector<1x256xf32> to vector<4x256xf32>
    %428 = vector.broadcast %418 : vector<4x1xf32> to vector<4x256xf32>
    %429 = arith.mulf %428, %427 : vector<4x256xf32>
    %430 = arith.addf %412, %429 : vector<4x256xf32>
    %c0_44 = arith.constant 0 : index
    %c29 = arith.constant 29 : index
    %431 = vector.load %arg1[%c0_44, %c29] : memref<4x36xf32, #tpu.memory_space<vmem>>, vector<4x1xf32>
    %432 = vector.extract_strided_slice %417 {offsets = [1, 0], sizes = [1, 256], strides = [1, 1]} : vector<8x256xf32> to vector<1x256xf32>
    %433 = vector.shape_cast %432 : vector<1x256xf32> to vector<1x256xf32>
    %434 = vector.broadcast %433 : vector<1x256xf32> to vector<4x256xf32>
    %435 = vector.broadcast %431 : vector<4x1xf32> to vector<4x256xf32>
    %436 = arith.mulf %435, %434 : vector<4x256xf32>
    %437 = arith.addf %424, %436 : vector<4x256xf32>
    %438 = vector.extract_strided_slice %417 {offsets = [5, 0], sizes = [1, 256], strides = [1, 1]} : vector<8x256xf32> to vector<1x256xf32>
    %439 = vector.shape_cast %438 : vector<1x256xf32> to vector<1x256xf32>
    %440 = vector.broadcast %439 : vector<1x256xf32> to vector<4x256xf32>
    %441 = vector.broadcast %431 : vector<4x1xf32> to vector<4x256xf32>
    %442 = arith.mulf %441, %440 : vector<4x256xf32>
    %443 = arith.addf %430, %442 : vector<4x256xf32>
    %c0_45 = arith.constant 0 : index
    %c30 = arith.constant 30 : index
    %444 = vector.load %arg1[%c0_45, %c30] : memref<4x36xf32, #tpu.memory_space<vmem>>, vector<4x1xf32>
    %445 = vector.extract_strided_slice %417 {offsets = [2, 0], sizes = [1, 256], strides = [1, 1]} : vector<8x256xf32> to vector<1x256xf32>
    %446 = vector.shape_cast %445 : vector<1x256xf32> to vector<1x256xf32>
    %447 = vector.broadcast %446 : vector<1x256xf32> to vector<4x256xf32>
    %448 = vector.broadcast %444 : vector<4x1xf32> to vector<4x256xf32>
    %449 = arith.mulf %448, %447 : vector<4x256xf32>
    %450 = arith.addf %437, %449 : vector<4x256xf32>
    %451 = vector.extract_strided_slice %417 {offsets = [6, 0], sizes = [1, 256], strides = [1, 1]} : vector<8x256xf32> to vector<1x256xf32>
    %452 = vector.shape_cast %451 : vector<1x256xf32> to vector<1x256xf32>
    %453 = vector.broadcast %452 : vector<1x256xf32> to vector<4x256xf32>
    %454 = vector.broadcast %444 : vector<4x1xf32> to vector<4x256xf32>
    %455 = arith.mulf %454, %453 : vector<4x256xf32>
    %456 = arith.addf %443, %455 : vector<4x256xf32>
    %c0_46 = arith.constant 0 : index
    %c31 = arith.constant 31 : index
    %457 = vector.load %arg1[%c0_46, %c31] : memref<4x36xf32, #tpu.memory_space<vmem>>, vector<4x1xf32>
    %458 = vector.extract_strided_slice %417 {offsets = [3, 0], sizes = [1, 256], strides = [1, 1]} : vector<8x256xf32> to vector<1x256xf32>
    %459 = vector.shape_cast %458 : vector<1x256xf32> to vector<1x256xf32>
    %460 = vector.broadcast %459 : vector<1x256xf32> to vector<4x256xf32>
    %461 = vector.broadcast %457 : vector<4x1xf32> to vector<4x256xf32>
    %462 = arith.mulf %461, %460 : vector<4x256xf32>
    %463 = arith.addf %450, %462 : vector<4x256xf32>
    %464 = vector.extract_strided_slice %417 {offsets = [7, 0], sizes = [1, 256], strides = [1, 1]} : vector<8x256xf32> to vector<1x256xf32>
    %465 = vector.shape_cast %464 : vector<1x256xf32> to vector<1x256xf32>
    %466 = vector.broadcast %465 : vector<1x256xf32> to vector<4x256xf32>
    %467 = vector.broadcast %457 : vector<4x1xf32> to vector<4x256xf32>
    %468 = arith.mulf %467, %466 : vector<4x256xf32>
    %469 = arith.addf %456, %468 : vector<4x256xf32>
    %c239_i32 = arith.constant 239 : i32
    %470 = tpu.dynamic_rotate %0 by %c239_i32 dim 1 : vector<8x256xf32>, i32 -> vector<8x256xf32>
    %471 = arith.andi %9, %13 : vector<1x256xi1>
    %cst_47 = arith.constant 0.000000e+00 : f32
    %472 = vector.shape_cast %471 : vector<1x256xi1> to vector<1x256xi1>
    %473 = vector.broadcast %472 : vector<1x256xi1> to vector<8x256xi1>
    %474 = vector.broadcast %cst_47 : f32 to vector<8x256xf32>
    %475 = arith.select %473, %470, %474 : vector<8x256xi1>, vector<8x256xf32>
    %c0_48 = arith.constant 0 : index
    %c32 = arith.constant 32 : index
    %476 = vector.load %arg1[%c0_48, %c32] : memref<4x36xf32, #tpu.memory_space<vmem>>, vector<4x1xf32>
    %477 = vector.extract_strided_slice %475 {offsets = [0, 0], sizes = [1, 256], strides = [1, 1]} : vector<8x256xf32> to vector<1x256xf32>
    %478 = vector.shape_cast %477 : vector<1x256xf32> to vector<1x256xf32>
    %479 = vector.broadcast %478 : vector<1x256xf32> to vector<4x256xf32>
    %480 = vector.broadcast %476 : vector<4x1xf32> to vector<4x256xf32>
    %481 = arith.mulf %480, %479 : vector<4x256xf32>
    %482 = arith.addf %463, %481 : vector<4x256xf32>
    %483 = vector.extract_strided_slice %475 {offsets = [4, 0], sizes = [1, 256], strides = [1, 1]} : vector<8x256xf32> to vector<1x256xf32>
    %484 = vector.shape_cast %483 : vector<1x256xf32> to vector<1x256xf32>
    %485 = vector.broadcast %484 : vector<1x256xf32> to vector<4x256xf32>
    %486 = vector.broadcast %476 : vector<4x1xf32> to vector<4x256xf32>
    %487 = arith.mulf %486, %485 : vector<4x256xf32>
    %488 = arith.addf %469, %487 : vector<4x256xf32>
    %c0_49 = arith.constant 0 : index
    %c33 = arith.constant 33 : index
    %489 = vector.load %arg1[%c0_49, %c33] : memref<4x36xf32, #tpu.memory_space<vmem>>, vector<4x1xf32>
    %490 = vector.extract_strided_slice %475 {offsets = [1, 0], sizes = [1, 256], strides = [1, 1]} : vector<8x256xf32> to vector<1x256xf32>
    %491 = vector.shape_cast %490 : vector<1x256xf32> to vector<1x256xf32>
    %492 = vector.broadcast %491 : vector<1x256xf32> to vector<4x256xf32>
    %493 = vector.broadcast %489 : vector<4x1xf32> to vector<4x256xf32>
    %494 = arith.mulf %493, %492 : vector<4x256xf32>
    %495 = arith.addf %482, %494 : vector<4x256xf32>
    %496 = vector.extract_strided_slice %475 {offsets = [5, 0], sizes = [1, 256], strides = [1, 1]} : vector<8x256xf32> to vector<1x256xf32>
    %497 = vector.shape_cast %496 : vector<1x256xf32> to vector<1x256xf32>
    %498 = vector.broadcast %497 : vector<1x256xf32> to vector<4x256xf32>
    %499 = vector.broadcast %489 : vector<4x1xf32> to vector<4x256xf32>
    %500 = arith.mulf %499, %498 : vector<4x256xf32>
    %501 = arith.addf %488, %500 : vector<4x256xf32>
    %c0_50 = arith.constant 0 : index
    %c34 = arith.constant 34 : index
    %502 = vector.load %arg1[%c0_50, %c34] : memref<4x36xf32, #tpu.memory_space<vmem>>, vector<4x1xf32>
    %503 = vector.extract_strided_slice %475 {offsets = [2, 0], sizes = [1, 256], strides = [1, 1]} : vector<8x256xf32> to vector<1x256xf32>
    %504 = vector.shape_cast %503 : vector<1x256xf32> to vector<1x256xf32>
    %505 = vector.broadcast %504 : vector<1x256xf32> to vector<4x256xf32>
    %506 = vector.broadcast %502 : vector<4x1xf32> to vector<4x256xf32>
    %507 = arith.mulf %506, %505 : vector<4x256xf32>
    %508 = arith.addf %495, %507 : vector<4x256xf32>
    %509 = vector.extract_strided_slice %475 {offsets = [6, 0], sizes = [1, 256], strides = [1, 1]} : vector<8x256xf32> to vector<1x256xf32>
    %510 = vector.shape_cast %509 : vector<1x256xf32> to vector<1x256xf32>
    %511 = vector.broadcast %510 : vector<1x256xf32> to vector<4x256xf32>
    %512 = vector.broadcast %502 : vector<4x1xf32> to vector<4x256xf32>
    %513 = arith.mulf %512, %511 : vector<4x256xf32>
    %514 = arith.addf %501, %513 : vector<4x256xf32>
    %c0_51 = arith.constant 0 : index
    %c35 = arith.constant 35 : index
    %515 = vector.load %arg1[%c0_51, %c35] : memref<4x36xf32, #tpu.memory_space<vmem>>, vector<4x1xf32>
    %516 = vector.extract_strided_slice %475 {offsets = [3, 0], sizes = [1, 256], strides = [1, 1]} : vector<8x256xf32> to vector<1x256xf32>
    %517 = vector.shape_cast %516 : vector<1x256xf32> to vector<1x256xf32>
    %518 = vector.broadcast %517 : vector<1x256xf32> to vector<4x256xf32>
    %519 = vector.broadcast %515 : vector<4x1xf32> to vector<4x256xf32>
    %520 = arith.mulf %519, %518 : vector<4x256xf32>
    %521 = arith.addf %508, %520 : vector<4x256xf32>
    %522 = vector.extract_strided_slice %475 {offsets = [7, 0], sizes = [1, 256], strides = [1, 1]} : vector<8x256xf32> to vector<1x256xf32>
    %523 = vector.shape_cast %522 : vector<1x256xf32> to vector<1x256xf32>
    %524 = vector.broadcast %523 : vector<1x256xf32> to vector<4x256xf32>
    %525 = vector.broadcast %515 : vector<4x1xf32> to vector<4x256xf32>
    %526 = arith.mulf %525, %524 : vector<4x256xf32>
    %527 = arith.addf %514, %526 : vector<4x256xf32>
    %c0_52 = arith.constant 0 : index
    %c0_53 = arith.constant 0 : index
    %528 = vector.load %arg2[%c0_52, %c0_53] : memref<4x1xf32, #tpu.memory_space<vmem>>, vector<4x1xf32>
    %529 = vector.broadcast %528 : vector<4x1xf32> to vector<4x256xf32>
    %530 = arith.addf %521, %529 : vector<4x256xf32>
    %cst_54 = arith.constant 0.000000e+00 : f32
    %cst_55 = arith.constant 1.000000e+00 : f32
    %531 = vector.broadcast %cst_54 : f32 to vector<4x256xf32>
    %532 = arith.maximumf %531, %530 : vector<4x256xf32>
    %533 = vector.broadcast %cst_55 : f32 to vector<4x256xf32>
    %534 = arith.minimumf %533, %532 : vector<4x256xf32>
    %535 = vector.extract_strided_slice %0 {offsets = [0, 0], sizes = [4, 256], strides = [1, 1]} : vector<8x256xf32> to vector<4x256xf32>
    %536 = arith.mulf %535, %534 : vector<4x256xf32>
    %c0_56 = arith.constant 0 : index
    %c0_57 = arith.constant 0 : index
    %537 = vector.load %arg3[%c0_56, %c0_57] : memref<8x256xf32, #tpu.memory_space<vmem>>, vector<4x256xf32>
    tpu.vector_store %arg3[%c0_56, %c0_57], %536 {strides = array<i32>} : memref<8x256xf32, #tpu.memory_space<vmem>>, vector<4x256xf32>,
    %538 = vector.broadcast %528 : vector<4x1xf32> to vector<4x256xf32>
    %539 = arith.addf %527, %538 : vector<4x256xf32>
    %cst_58 = arith.constant 0.000000e+00 : f32
    %cst_59 = arith.constant 1.000000e+00 : f32
    %540 = vector.broadcast %cst_58 : f32 to vector<4x256xf32>
    %541 = arith.maximumf %540, %539 : vector<4x256xf32>
    %542 = vector.broadcast %cst_59 : f32 to vector<4x256xf32>
    %543 = arith.minimumf %542, %541 : vector<4x256xf32>
    %544 = vector.extract_strided_slice %0 {offsets = [4, 0], sizes = [4, 256], strides = [1, 1]} : vector<8x256xf32> to vector<4x256xf32>
    %545 = arith.mulf %544, %543 : vector<4x256xf32>
    %c4_60 = arith.constant 4 : index
    %c0_61 = arith.constant 0 : index
    %546 = vector.load %arg3[%c4_60, %c0_61] : memref<8x256xf32, #tpu.memory_space<vmem>>, vector<4x256xf32>
    tpu.vector_store %arg3[%c4_60, %c0_61], %545 {strides = array<i32>} : memref<8x256xf32, #tpu.memory_space<vmem>>, vector<4x256xf32>,
    return
  }
}

</mosaic_0001>

<bundles_post_ra>
// kernel: att_block_lite.1
= control target key start
LH: loop header
LB: loop body
LE: loop exit
PB: predicated region body
PF: predicated region fallthrough
CT: control target
= control target key end

     0   :  { %v1273_v0 = vmov 0   ;;  %v1274_v3 = vmov 2   ;;  %s1275_s16 = smov 17   ;;  %v1276_v5 = vmov 1   ;;  %v1277_v6 = vmov 3   ;;  %s1281_s19 = smov 15   ;;  %s1938_s1 = inlined_call_operand.vmem [shape: f32[4,36], index: 1, kind: input, shape index: {}]   ;;  %s1939_s0 = inlined_call_operand.vmem [shape: f32[8,256], index: 0, kind: input, shape index: {}]   ;;  %s1940_s2 = inlined_call_operand.vmem [shape: f32[4,1], index: 2, kind: input, shape index: {}]   ;;  %s1941_s3 = inlined_call_operand.vmem [shape: f32[8,256], index: 3, kind: output, shape index: {}]  }
   0x1   :  { %1233 = vset.pattern.permute.xlu1 %v1273_v0  ;;  %v1341_v1 = vld [vmem:[%s1938_s1] sm:$0xf]  ;;  %1235 = vset.pattern.permute.xlu0 %v1274_v3  ;;  %v1353_v4 = vld [vmem:[%s1939_s0 + $0x8] sm:$0xff]  ;;  %s1278_s1 = smov 16   ;;  %v1279_v7 = vmov 5   ;;  %v1280_v8 = vmov 4   ;;  %v16_v37 = vlaneseq }
   0x2   :  { %v1346_v2 = vld [vmem:[%s1939_s0] sm:$0xff]  ;;  %57 = vperm.xlu1 %1233, %v1341_v1   ;;  %v1282_v9 = vmov 8   ;;  %v1283_v10 = vmov 6   ;;  %v1284_v11 = vmov 7   ;;  %v1285_v12 = vmov 11   ;;  %s1287_s20 = smov 1  }
   0x3   :  { %31 = vrot.lane.b32.xlu0 %v1346_v2, %s1275_s16  ;;  %v1286_v13 = vmov 9   ;;  %v1288_v14 = vmov 14   ;;  %v1289_v15 = vmov 10   ;;  %v1290_v16 = vmov 17   ;;  %s1294_s21 = smov 127   ;;  %s1297_s22 = smov 113  }
   0x4   :  { %v1291_v17 = vmov 12   ;;  %v1292_v18 = vmov 20   ;;  %v1293_v19 = vmov 13   ;;  %v1295_v20 = vmov 23   ;;  %s1312_s23 = smov 112   ;;  %s1315_s24 = smov 111  }
   0x5   :  { %v1296_v21 = vmov 15   ;;  %v1298_v22 = vmov 26   ;;  %v1299_v23 = vmov 16   ;;  %v1300_v24 = vmov 29   ;;  %v1153_v62 = vld [vmem:[%s1940_s2] sm:$0xf] }
   0x6   :  { %1234 = vset.pattern.permute.xlu1 %v1276_v5  ;;  %v1301_v25 = vmov 18   ;;  %v1302_v26 = vmov 30   ;;  %v1303_v27 = vmov 19   ;;  %v1304_v28 = vmov 33  }
   0x7   :  { %33 = vrot.lane.b32.xlu0 %v1353_v4, %s1275_s16  ;;  %85 = vperm.xlu1 %1234, %v1341_v1   ;;  %v1305_v29 = vmov 21   ;;  %v1306_v30 = vmov 34   ;;  %v1307_v31 = vmov 22   ;;  %v1308_v32 = vmov 24  }
   0x8   :  { %v1309_v33 = vmov 25   ;;  %v1310_v34 = vmov 27   ;;  %v1311_v35 = vmov 28   ;;  %v1313_v36 = vmov 31  }
   0x9   :  { %v1406_v38 = vand.u32 127, %v16_v37  ;;  %v1314_v39 = vmov 32   ;;  %v1316_v46 = vmov 35   ;;  %v48_v55 = vshrl.u32 %v16_v37, 7 }
   0xb   :  { %113 = vperm.xlu0 %1235, %v1341_v1   ;;  %1236 = vset.pattern.permute.xlu1 %v1277_v6  ;;  %v1412_v41 = vadd.s32 128, %v1406_v38  ;;  %v19_v43 = vshra.s32 %v1406_v38, 4  ;;  %v21_v44 = vand.u32 15, %v1406_v38  ;;  %vm35_vm4 = vcmp.lt.s32.totalorder %v1406_v38, 17 }
   0xc   :  { %141 = vperm.xlu1 %1236, %v1341_v1   ;;  %v1456_v56 = vsub.s32 1, %v48_v55  ;;  %v1458_v59 = vsub.s32 5, %v48_v55  ;;  %v1463_v63 = vsub.s32 0, %v48_v55  ;;  %v1467_v3 = vsub.s32 2, %v48_v55 }
   0xd   :  { %v20_v47 = vshra.s32 %v1412_v41, 4  ;;  %v22_v48 = vand.u32 15, %v1412_v41  ;;  %vm1422_vm0 = vcmp.ge.s32.totalorder %v19_v43, 1  ;;  %vm1428_vm1 = vcmp.ge.s32.totalorder %v21_v44, 1 }
   0xe   :  { %vm38_vm5 = vmand %vm1422_vm0, %vm1428_vm1  ;;  %v1469_v5 = vsub.s32 6, %v48_v55  ;;  %vm164_vm7 = vcmp.lt.s32.totalorder %v1406_v38, 16  ;;  %vm1523_vm8 = vcmp.lt.s32.totalorder %v21_v44, 15  ;;  %vm289_vm10 = vcmp.lt.s32.totalorder %v1406_v38, 15 }
   0xf   :  { %162 = vrot.lane.b32.xlu0 %v1353_v4, %s1278_s1  ;;  %vm1434_vm2 = vcmp.ge.s32.totalorder %v20_v47, 1  ;;  %vm1440_vm3 = vcmp.ge.s32.totalorder %v22_v48, 1  ;;  %vm1529_vm9 = vcmp.lt.s32.totalorder %v22_v48, 15  ;;  %vm292_vm11 = vmand %vm1422_vm0, %vm1523_vm8  ;;  %vm416_vm13 = vcmp.lt.s32.totalorder %v1406_v38, 1 }
  0x10   :  { %1238 = vset.pattern.permute.xlu0 %v1279_v7  ;;  %160 = vrot.lane.b32.xlu1 %v1346_v2, %s1278_s1  ;;  %vm39_vm6 = vmand %vm1434_vm2, %vm1440_vm3  ;;  %vm653_vm14 = vcmp.lt.s32.totalorder %v1406_v38, 127  ;;  %vm1748_vm15 = vcmp.lt.s32.totalorder %v19_v43, 15 }
  0x11   :  { %1237 = vset.pattern.permute.xlu1 %v1280_v8  ;;  %v1472_v8 = vsub.s32 3, %v48_v55  ;;  %vm293_vm12 = vmand %vm1434_vm2, %vm1529_vm9 }
  0x13   :  { %210 = vperm.xlu0 %1238, %v1341_v1  }
  0x14   :  { %182 = vperm.xlu1 %1237, %v1341_v1  }
  0x17   :  { %285 = vrot.lane.b32.xlu0 %v1346_v2, %s1281_s19 }
  0x18   :  { %1241 = vset.pattern.permute.xlu0 %v1282_v9  ;;  %1239 = vset.pattern.permute.xlu1 %v1283_v10 }
  0x19   :  { %238 = vperm.xlu1 %1239, %v1341_v1  }
  0x1b   :  { %309 = vperm.xlu0 %1241, %v1341_v1  }
  0x1d   :  { %1240 = vset.pattern.permute.xlu1 %v1284_v11  ;;  %v1476_v11 = vsub.s32 7, %v48_v55 }
  0x1e   :  { %266 = vperm.xlu1 %1240, %v1341_v1  }
  0x1f   :  { %1244 = vset.pattern.permute.xlu0 %v1285_v12 }
  0x20   :  { %393 = vperm.xlu0 %1244, %v1341_v1  }
  0x22   :  { %287 = vrot.lane.b32.xlu1 %v1353_v4, %s1281_s19 }
  0x23   :  { %1242 = vset.pattern.permute.xlu1 %v1286_v13 }
  0x24   :  { %412 = vrot.lane.b32.xlu0 %v1346_v2, %s1287_s20 }
  0x25   :  { %1247 = vset.pattern.permute.xlu0 %v1288_v14 }
  0x26   :  { %337 = vperm.xlu1 %1242, %v1341_v1  }
  0x28   :  { %490 = vperm.xlu0 %1247, %v1341_v1  }
  0x2a   :  { %1243 = vset.pattern.permute.xlu1 %v1289_v15 }
  0x2b   :  { %365 = vperm.xlu1 %1243, %v1341_v1  }
  0x2c   :  { %1250 = vset.pattern.permute.xlu0 %v1290_v16 }
  0x2d   :  { %574 = vperm.xlu0 %1250, %v1341_v1  }
  0x2f   :  { %1245 = vset.pattern.permute.xlu1 %v1291_v17 }
  0x30   :  { %434 = vperm.xlu1 %1245, %v1341_v1  }
  0x31   :  { %1253 = vset.pattern.permute.xlu0 %v1292_v18 }
  0x32   :  { %671 = vperm.xlu0 %1253, %v1341_v1  }
  0x34   :  { %1246 = vset.pattern.permute.xlu1 %v1293_v19 }
  0x35   :  { %462 = vperm.xlu1 %1246, %v1341_v1  }
  0x36   :  { %651 = vrot.lane.b32.xlu0 %v1353_v4, %s1294_s21 }
  0x37   :  { %1256 = vset.pattern.permute.xlu0 %v1295_v20 }
  0x39   :  { %414 = vrot.lane.b32.xlu1 %v1353_v4, %s1287_s20 }
  0x3a   :  { %755 = vperm.xlu0 %1256, %v1341_v1   ;;  %1248 = vset.pattern.permute.xlu1 %v1296_v21 }
  0x3d   :  { %518 = vperm.xlu1 %1248, %v1341_v1  }
  0x3e   :  { %774 = vrot.lane.b32.xlu0 %v1346_v2, %s1297_s22 }
  0x3f   :  { %1259 = vset.pattern.permute.xlu0 %v1298_v22 }
  0x41   :  { %1249 = vset.pattern.permute.xlu1 %v1299_v23 }
  0x42   :  { %854 = vperm.xlu0 %1259, %v1341_v1   ;;  %546 = vperm.xlu1 %1249, %v1341_v1  }
  0x46   :  { %1262 = vset.pattern.permute.xlu0 %v1300_v24  ;;  %1251 = vset.pattern.permute.xlu1 %v1301_v25 }
  0x47   :  { %951 = vperm.xlu0 %1262, %v1341_v1   ;;  %602 = vperm.xlu1 %1251, %v1341_v1  }
  0x4b   :  { %1263 = vset.pattern.permute.xlu0 %v1302_v26  ;;  %1252 = vset.pattern.permute.xlu1 %v1303_v27 }
  0x4c   :  { %979 = vperm.xlu0 %1263, %v1341_v1   ;;  %630 = vperm.xlu1 %1252, %v1341_v1  }
  0x50   :  { %1266 = vset.pattern.permute.xlu0 %v1304_v28  ;;  %1254 = vset.pattern.permute.xlu1 %v1305_v29 }
  0x51   :  { %1078 = vperm.xlu0 %1266, %v1341_v1   ;;  %699 = vperm.xlu1 %1254, %v1341_v1  }
  0x55   :  { %1267 = vset.pattern.permute.xlu0 %v1306_v30  ;;  %649 = vrot.lane.b32.xlu1 %v1346_v2, %s1294_s21 }
  0x56   :  { %1106 = vperm.xlu0 %1267, %v1341_v1   ;;  %1255 = vset.pattern.permute.xlu1 %v1307_v31 }
  0x59   :  { %727 = vperm.xlu1 %1255, %v1341_v1  }
  0x5a   :  { %1270 = vset.pattern.permute.xlu0 %v1273_v0 }
  0x5d   :  { %1257 = vset.pattern.permute.xlu1 %v1308_v32 }
  0x5e   :  { %798 = vperm.xlu1 %1257, %v1341_v1  }
  0x62   :  { %1258 = vset.pattern.permute.xlu1 %v1309_v33 }
  0x63   :  { %826 = vperm.xlu1 %1258, %v1341_v1  }
  0x67   :  { %776 = vrot.lane.b32.xlu1 %v1353_v4, %s1297_s22 }
  0x68   :  { %1260 = vset.pattern.permute.xlu1 %v1310_v34 }
  0x6b   :  { %882 = vperm.xlu1 %1260, %v1341_v1  }
  0x6f   :  { %1261 = vset.pattern.permute.xlu1 %v1311_v35 }
  0x70   :  { %923 = vperm.xlu1 %1261, %v1341_v1  }
  0x74   :  { %901 = vrot.lane.b32.xlu1 %v1346_v2, %s1312_s23 }
  0x75   :  { %1264 = vset.pattern.permute.xlu1 %v1313_v36  ;;  %v32_v42 = vpop.permute.xlu0 %31 }
  0x78   :  { %903 = vrot.lane.b32.xlu1 %v1353_v4, %s1312_s23 }
  0x79   :  { %v34_v53 = vpop.permute.xlu0 %33 }
  0x7a   :  { %v36_v57 = vsel %vm35_vm4, %v32_v42, %v34_v53  ;;  %v37_v58 = vsel %vm35_vm4, %v34_v53, %v32_v42  ;;  %vm781_vm4 = vmand %vm1748_vm15, %vm1428_vm1 }
  0x7b   :  { %v44_v6 = vsel %vm38_vm5, %v37_v58, 0.0  ;;  %v45_v7 = vsel %vm39_vm6, %v36_v57, 0.0  ;;  %vm1033_vm6 = vmand %vm1748_vm15, %vm1523_vm8 }
  0x7c   :  { %1007 = vperm.xlu1 %1264, %v1341_v1   ;;  %v79_v9 = vrot.slane %v44_v6, %v1456_v56  ;;  %v83_v10 = vrot.slane %v45_v7, %v1456_v56  ;;  %v95_v12 = vrot.slane %v44_v6, %v1458_v59  ;;  %v99_v13 = vrot.slane %v45_v7, %v1458_v59 }
  0x7d   :  { %v50_v16 = vrot.slane %v44_v6, %v1463_v63  ;;  %v107_v19 = vrot.slane %v44_v6, %v1467_v3  ;;  %v111_v20 = vrot.slane %v45_v7, %v1467_v3  ;;  %v123_v21 = vrot.slane %v44_v6, %v1469_v5 }
  0x7e   :  { %v127_v22 = vrot.slane %v45_v7, %v1469_v5  ;;  %v135_v29 = vrot.slane %v44_v6, %v1472_v8  ;;  %v139_v30 = vrot.slane %v45_v7, %v1472_v8  ;;  %v151_v33 = vrot.slane %v44_v6, %v1476_v11 }
  0x7f   :  { %v155_v34 = vrot.slane %v45_v7, %v1476_v11 }
  0x80   :  { %1265 = vset.pattern.permute.xlu1 %v1314_v39 }
  0x81   :  { %v1408_v40 = vpop.permute.xlu1 %57  ;;  %1050 = vperm.xlu1 %1265, %v1341_v1  }
  0x82   :  { %v60_v31 = vmul.f32 %v1408_v40, %v50_v16 }
  0x85   :  { %1026 = vrot.lane.b32.xlu1 %v1346_v2, %s1315_s24 }
  0x86   :  { %v86_v45 = vpop.permute.xlu1 %85  ;;  %1268 = vset.pattern.permute.xlu1 %v1316_v46 }
  0x87   :  { %v88_v23 = vmul.f32 %v86_v45, %v79_v9  ;;  %v89_v24 = vmul.f32 %v86_v45, %v83_v10  ;;  %v100_v27 = vmul.f32 %v95_v12, %v86_v45  ;;  %v101_v28 = vmul.f32 %v99_v13, %v86_v45 }
  0x89   :  { %1028 = vrot.lane.b32.xlu1 %v1353_v4, %s1315_s24  ;;  %v90_v45 = vadd.f32 %v88_v23, %v60_v31 }
  0x8a   :  { %v114_v60 = vpop.permute.xlu0 %113 }
  0x8b   :  { %v1445_v54 = vpop.permute.xlu1 %141  ;;  %v116_v53 = vmul.f32 %v114_v60, %v107_v19 }
  0x8d   :  { %1134 = vperm.xlu1 %1268, %v1341_v1   ;;  %v1465_v1 = vsub.s32 4, %v48_v55  ;;  %v117_v55 = vmul.f32 %v114_v60, %v111_v20  ;;  %v118_v12 = vadd.f32 %v116_v53, %v90_v45 }
  0x8e   :  { %v163_v14 = vpop.permute.xlu0 %162 }
  0x8f   :  { %v161_v61 = vpop.permute.xlu1 %160  ;;  %v67_v17 = vrot.slane %v44_v6, %v1465_v1  ;;  %v71_v18 = vrot.slane %v45_v7, %v1465_v1 }
  0x90   :  { %v165_v25 = vsel %vm164_vm7, %v161_v61, %v163_v14  ;;  %v166_v26 = vsel %vm164_vm7, %v163_v14, %v161_v61  ;;  %v128_v61 = vmul.f32 %v123_v21, %v114_v60  ;;  %v144_v14 = vmul.f32 %v1445_v54, %v135_v29 }
  0x91   :  { %1269 = vset.pattern.permute.xlu1 %v1273_v0  ;;  %v54_v0 = vrot.slane %v45_v7, %v1463_v63  ;;  %v72_v36 = vmul.f32 %v67_v17, %v1408_v40  ;;  %v73_v37 = vmul.f32 %v71_v18, %v1408_v40  ;;  %v1501_v39 = vsel %vm1422_vm0, %v166_v26, 0.0 }
  0x92   :  { %1156 = vperm.xlu1 %1269, %v1153_v62   ;;  %v1505_v42 = vsel %vm1434_vm2, %v165_v25, 0.0  ;;  %v129_v62 = vmul.f32 %v127_v22, %v114_v60  ;;  %v176_v6 = vrot.slane %v1501_v39, %v1463_v63  ;;  %v192_v7 = vrot.slane %v1501_v39, %v1465_v1  ;;  %v211_v21 = vpop.permute.xlu0 %210 }
  0x93   :  { %v183_v15 = vpop.permute.xlu1 %182  ;;  %v61_v32 = vmul.f32 %v1408_v40, %v54_v0  ;;  %v102_v57 = vadd.f32 %v100_v27, %v72_v36  ;;  %v103_v58 = vadd.f32 %v101_v28, %v73_v37  ;;  %v180_v40 = vrot.slane %v1505_v42, %v1463_v63 }
  0x94   :  { %v196_v9 = vrot.slane %v1505_v42, %v1465_v1  ;;  %v145_v60 = vmul.f32 %v1445_v54, %v139_v30  ;;  %v156_v17 = vmul.f32 %v151_v33, %v1445_v54  ;;  %v157_v18 = vmul.f32 %v155_v34, %v1445_v54 }
  0x95   :  { %v91_v46 = vadd.f32 %v89_v24, %v61_v32  ;;  %v130_v16 = vadd.f32 %v128_v61, %v102_v57  ;;  %v131_v0 = vadd.f32 %v129_v62, %v103_v58  ;;  %v185_v19 = vmul.f32 %v183_v15, %v176_v6 }
  0x96   :  { %v186_v20 = vmul.f32 %v183_v15, %v180_v40  ;;  %v197_v23 = vmul.f32 %v192_v7, %v183_v15  ;;  %v198_v24 = vmul.f32 %v196_v9, %v183_v15  ;;  %v146_v26 = vadd.f32 %v144_v14, %v118_v12  ;;  %v286_v33 = vpop.permute.xlu0 %285 }
  0x97   :  { %v119_v13 = vadd.f32 %v117_v55, %v91_v46  ;;  %v204_v28 = vrot.slane %v1501_v39, %v1456_v56  ;;  %v208_v44 = vrot.slane %v1505_v42, %v1456_v56  ;;  %v158_v29 = vadd.f32 %v156_v17, %v130_v16 }
  0x98   :  { %v1495_v35 = vpop.permute.xlu1 %238  ;;  %v159_v30 = vadd.f32 %v157_v18, %v131_v0  ;;  %v220_v15 = vrot.slane %v1501_v39, %v1458_v59  ;;  %v224_v48 = vrot.slane %v1505_v42, %v1458_v59  ;;  %v187_v31 = vadd.f32 %v185_v19, %v146_v26 }
  0x99   :  { %v147_v27 = vadd.f32 %v145_v60, %v119_v13  ;;  %v199_v34 = vadd.f32 %v197_v23, %v158_v29  ;;  %v213_v53 = vmul.f32 %v211_v21, %v204_v28  ;;  %v214_v55 = vmul.f32 %v211_v21, %v208_v44 }
  0x9a   :  { %v200_v36 = vadd.f32 %v198_v24, %v159_v30  ;;  %v225_v57 = vmul.f32 %v220_v15, %v211_v21  ;;  %v226_v58 = vmul.f32 %v224_v48, %v211_v21  ;;  %v232_v49 = vrot.slane %v1501_v39, %v1467_v3  ;;  %v310_v26 = vpop.permute.xlu0 %309 }
  0x9b   :  { %v188_v32 = vadd.f32 %v186_v20, %v147_v27  ;;  %v236_v61 = vrot.slane %v1505_v42, %v1467_v3  ;;  %v248_v51 = vrot.slane %v1501_v39, %v1469_v5  ;;  %v252_v62 = vrot.slane %v1505_v42, %v1469_v5 }
  0x9c   :  { %v215_v7 = vadd.f32 %v213_v53, %v187_v31  ;;  %v227_v12 = vadd.f32 %v225_v57, %v199_v34  ;;  %v228_v13 = vadd.f32 %v226_v58, %v200_v36  ;;  %v241_v14 = vmul.f32 %v1495_v35, %v232_v49 }
  0x9d   :  { %v1515_v10 = vpop.permute.xlu1 %266  ;;  %v216_v9 = vadd.f32 %v214_v55, %v188_v32  ;;  %v242_v60 = vmul.f32 %v1495_v35, %v236_v61  ;;  %v253_v16 = vmul.f32 %v248_v51, %v1495_v35  ;;  %v254_v0 = vmul.f32 %v252_v62, %v1495_v35 }
  0x9e   :  { %v260_v18 = vrot.slane %v1501_v39, %v1472_v8  ;;  %v264_v19 = vrot.slane %v1505_v42, %v1472_v8  ;;  %v276_v23 = vrot.slane %v1501_v39, %v1476_v11  ;;  %v280_v24 = vrot.slane %v1505_v42, %v1476_v11 }
  0x9f   :  { %v243_v30 = vadd.f32 %v241_v14, %v215_v7  ;;  %v244_v39 = vadd.f32 %v242_v60, %v216_v9  ;;  %v255_v31 = vadd.f32 %v253_v16, %v227_v12  ;;  %v256_v32 = vadd.f32 %v254_v0, %v228_v13  ;;  %v394_v49 = vpop.permute.xlu0 %393 }
  0xa0   :  { %v269_v27 = vmul.f32 %v1515_v10, %v260_v18  ;;  %v270_v28 = vmul.f32 %v1515_v10, %v264_v19  ;;  %v281_v44 = vmul.f32 %v276_v23, %v1515_v10  ;;  %v282_v29 = vmul.f32 %v280_v24, %v1515_v10 }
  0xa1   :  { %v288_v54 = vpop.permute.xlu1 %287  ;;  %vm1754_vm0 = vcmp.lt.s32.totalorder %v20_v47, 15  ;;  %vm778_vm2 = vcmp.lt.s32.totalorder %v1406_v38, 113 }
  0xa2   :  { %v290_v37 = vsel %vm289_vm10, %v286_v33, %v288_v54  ;;  %v291_v45 = vsel %vm289_vm10, %v288_v54, %v286_v33  ;;  %v271_v36 = vadd.f32 %v269_v27, %v243_v30  ;;  %v283_v55 = vadd.f32 %v281_v44, %v255_v31  ;;  %vm782_vm5 = vmand %vm1754_vm0, %vm1440_vm3 }
  0xa3   :  { %v1562_v6 = vsel %vm292_vm11, %v291_v45, 0.0  ;;  %v1564_v40 = vsel %vm293_vm12, %v290_v37, 0.0  ;;  %v272_v37 = vadd.f32 %v270_v28, %v244_v39  ;;  %v284_v57 = vadd.f32 %v282_v29, %v256_v32  ;;  %v413_v16 = vpop.permute.xlu0 %412  ;;  %vm1034_vm7 = vmand %vm1754_vm0, %vm1529_vm9 }
  0xa4   :  { %v303_v20 = vrot.slane %v1562_v6, %v1463_v63  ;;  %v307_v21 = vrot.slane %v1564_v40, %v1463_v63  ;;  %v319_v35 = vrot.slane %v1562_v6, %v1465_v1  ;;  %v323_v54 = vrot.slane %v1564_v40, %v1465_v1 }
  0xa5   :  { %v338_v46 = vpop.permute.xlu1 %337  ;;  %v331_v45 = vrot.slane %v1562_v6, %v1456_v56  ;;  %v335_v53 = vrot.slane %v1564_v40, %v1456_v56  ;;  %v347_v10 = vrot.slane %v1562_v6, %v1458_v59  ;;  %v351_v58 = vrot.slane %v1564_v40, %v1458_v59 }
  0xa6   :  { %v312_v15 = vmul.f32 %v310_v26, %v303_v20  ;;  %v313_v48 = vmul.f32 %v310_v26, %v307_v21  ;;  %v324_v33 = vmul.f32 %v319_v35, %v310_v26  ;;  %v325_v34 = vmul.f32 %v323_v54, %v310_v26 }
  0xa7   :  { %v340_v12 = vmul.f32 %v338_v46, %v331_v45  ;;  %v341_v13 = vmul.f32 %v338_v46, %v335_v53  ;;  %v352_v14 = vmul.f32 %v347_v10, %v338_v46  ;;  %v353_v60 = vmul.f32 %v351_v58, %v338_v46 }
  0xa8   :  { %v314_v61 = vadd.f32 %v312_v15, %v271_v36  ;;  %v315_v51 = vadd.f32 %v313_v48, %v272_v37  ;;  %v326_v62 = vadd.f32 %v324_v33, %v283_v55  ;;  %v327_v7 = vadd.f32 %v325_v34, %v284_v57 }
  0xa9   :  { %v359_v19 = vrot.slane %v1562_v6, %v1467_v3  ;;  %v363_v20 = vrot.slane %v1564_v40, %v1467_v3  ;;  %v375_v24 = vrot.slane %v1562_v6, %v1469_v5  ;;  %v379_v35 = vrot.slane %v1564_v40, %v1469_v5 }
  0xaa   :  { %v366_v17 = vpop.permute.xlu1 %365  ;;  %v342_v0 = vadd.f32 %v340_v12, %v314_v61  ;;  %v343_v18 = vadd.f32 %v341_v13, %v315_v51  ;;  %v354_v21 = vadd.f32 %v352_v14, %v326_v62  ;;  %v355_v23 = vadd.f32 %v353_v60, %v327_v7 }
  0xab   :  { %v368_v54 = vmul.f32 %v366_v17, %v359_v19  ;;  %v369_v26 = vmul.f32 %v366_v17, %v363_v20  ;;  %v380_v44 = vmul.f32 %v375_v24, %v366_v17  ;;  %v381_v29 = vmul.f32 %v379_v35, %v366_v17  ;;  %v491_v24 = vpop.permute.xlu0 %490 }
  0xac   :  { %v387_v15 = vrot.slane %v1562_v6, %v1472_v8  ;;  %v391_v48 = vrot.slane %v1564_v40, %v1472_v8  ;;  %v403_v31 = vrot.slane %v1562_v6, %v1476_v11  ;;  %v407_v17 = vrot.slane %v1564_v40, %v1476_v11 }
  0xad   :  { %v370_v45 = vadd.f32 %v368_v54, %v342_v0  ;;  %v371_v53 = vadd.f32 %v369_v26, %v343_v18  ;;  %v382_v6 = vadd.f32 %v380_v44, %v354_v21  ;;  %v383_v55 = vadd.f32 %v381_v29, %v355_v23 }
  0xae   :  { %v396_v57 = vmul.f32 %v394_v49, %v387_v15  ;;  %v397_v40 = vmul.f32 %v394_v49, %v391_v48  ;;  %v408_v61 = vmul.f32 %v403_v31, %v394_v49  ;;  %v409_v51 = vmul.f32 %v407_v17, %v394_v49 }
  0xaf   :  { %v435_v42 = vpop.permute.xlu1 %434 }
  0xb0   :  { %v398_v12 = vadd.f32 %v396_v57, %v370_v45  ;;  %v399_v13 = vadd.f32 %v397_v40, %v371_v53  ;;  %v410_v0 = vadd.f32 %v408_v61, %v382_v6  ;;  %v411_v18 = vadd.f32 %v409_v51, %v383_v55 }
  0xb4   :  { %v1598_v9 = vpop.permute.xlu1 %462 }
  0xb8   :  { %v415_v46 = vpop.permute.xlu1 %414 }
  0xb9   :  { %v417_v27 = vsel %vm416_vm13, %v413_v16, %v415_v46  ;;  %v418_v28 = vsel %vm416_vm13, %v415_v46, %v413_v16 }
  0xba   :  { %v1611_v30 = vsel %vm1428_vm1, %v418_v28, 0.0  ;;  %v1615_v39 = vsel %vm1440_vm3, %v417_v27, 0.0  ;;  %vm905_vm1 = vcmp.lt.s32.totalorder %v1406_v38, 112  ;;  %vm1030_vm3 = vcmp.lt.s32.totalorder %v1406_v38, 111 }
  0xbb   :  { %v428_v33 = vrot.slane %v1611_v30, %v1463_v63  ;;  %v432_v34 = vrot.slane %v1615_v39, %v1463_v63  ;;  %v444_v36 = vrot.slane %v1611_v30, %v1465_v1  ;;  %v448_v37 = vrot.slane %v1615_v39, %v1465_v1 }
  0xbc   :  { %v1625_v32 = vpop.permute.xlu1 %518  ;;  %v456_v14 = vrot.slane %v1611_v30, %v1456_v56  ;;  %v460_v60 = vrot.slane %v1615_v39, %v1456_v56  ;;  %v472_v19 = vrot.slane %v1611_v30, %v1458_v59  ;;  %v476_v20 = vrot.slane %v1615_v39, %v1458_v59 }
  0xbd   :  { %v437_v10 = vmul.f32 %v435_v42, %v428_v33  ;;  %v438_v58 = vmul.f32 %v435_v42, %v432_v34  ;;  %v449_v62 = vmul.f32 %v444_v36, %v435_v42  ;;  %v450_v7 = vmul.f32 %v448_v37, %v435_v42  ;;  %v575_v34 = vpop.permute.xlu0 %574 }
  0xbe   :  { %v465_v35 = vmul.f32 %v1598_v9, %v456_v14  ;;  %v466_v46 = vmul.f32 %v1598_v9, %v460_v60  ;;  %v484_v54 = vrot.slane %v1611_v30, %v1467_v3  ;;  %v488_v26 = vrot.slane %v1615_v39, %v1467_v3 }
  0xbf   :  { %v439_v49 = vadd.f32 %v437_v10, %v398_v12  ;;  %v440_v21 = vadd.f32 %v438_v58, %v399_v13  ;;  %v451_v42 = vadd.f32 %v449_v62, %v410_v0  ;;  %v452_v23 = vadd.f32 %v450_v7, %v411_v18 }
  0xc0   :  { %v477_v27 = vmul.f32 %v472_v19, %v1598_v9  ;;  %v478_v28 = vmul.f32 %v476_v20, %v1598_v9  ;;  %v500_v44 = vrot.slane %v1611_v30, %v1469_v5  ;;  %v504_v29 = vrot.slane %v1615_v39, %v1469_v5 }
  0xc1   :  { %v547_v16 = vpop.permute.xlu1 %546  ;;  %v467_v48 = vadd.f32 %v465_v35, %v439_v49  ;;  %v468_v31 = vadd.f32 %v466_v46, %v440_v21  ;;  %v512_v36 = vrot.slane %v1611_v30, %v1472_v8  ;;  %v516_v37 = vrot.slane %v1615_v39, %v1472_v8  ;;  %v1667_v62 = vpop.permute.xlu0 %671 }
  0xc2   :  { %v479_v17 = vadd.f32 %v477_v27, %v451_v42  ;;  %v480_v33 = vadd.f32 %v478_v28, %v452_v23  ;;  %v493_v9 = vmul.f32 %v491_v24, %v484_v54  ;;  %v494_v45 = vmul.f32 %v491_v24, %v488_v26 }
  0xc3   :  { %v528_v53 = vrot.slane %v1611_v30, %v1476_v11  ;;  %v532_v6 = vrot.slane %v1615_v39, %v1476_v11  ;;  %v505_v55 = vmul.f32 %v500_v44, %v491_v24  ;;  %v506_v57 = vmul.f32 %v504_v29, %v491_v24 }
  0xc4   :  { %v495_v40 = vadd.f32 %v493_v9, %v467_v48  ;;  %v496_v10 = vadd.f32 %v494_v45, %v468_v31  ;;  %v521_v7 = vmul.f32 %v1625_v32, %v512_v36  ;;  %v522_v12 = vmul.f32 %v1625_v32, %v516_v37 }
  0xc5   :  { %v507_v61 = vadd.f32 %v505_v55, %v479_v17  ;;  %v508_v51 = vadd.f32 %v506_v57, %v480_v33  ;;  %v544_v30 = vrot.slane %v1353_v4, %v1463_v63  ;;  %v540_v39 = vrot.slane %v1346_v2, %v1463_v63  ;;  %v652_v27 = vpop.permute.xlu0 %651 }
  0xc6   :  { %v1655_v15 = vpop.permute.xlu1 %602  ;;  %v533_v13 = vmul.f32 %v528_v53, %v1625_v32  ;;  %v534_v14 = vmul.f32 %v532_v6, %v1625_v32  ;;  %v560_v60 = vrot.slane %v1353_v4, %v1465_v1  ;;  %v556_v0 = vrot.slane %v1346_v2, %v1465_v1 }
  0xc7   :  { %v523_v18 = vadd.f32 %v521_v7, %v495_v40  ;;  %v524_v19 = vadd.f32 %v522_v12, %v496_v10  ;;  %v572_v20 = vrot.slane %v1353_v4, %v1456_v56  ;;  %v568_v49 = vrot.slane %v1346_v2, %v1456_v56 }
  0xc8   :  { %v535_v21 = vadd.f32 %v533_v13, %v507_v61  ;;  %v536_v42 = vadd.f32 %v534_v14, %v508_v51  ;;  %v588_v23 = vrot.slane %v1353_v4, %v1458_v59  ;;  %v584_v32 = vrot.slane %v1346_v2, %v1458_v59 }
  0xc9   :  { %v549_v35 = vmul.f32 %v547_v16, %v540_v39  ;;  %v550_v46 = vmul.f32 %v547_v16, %v544_v30  ;;  %v561_v54 = vmul.f32 %v556_v0, %v547_v16  ;;  %v562_v26 = vmul.f32 %v560_v60, %v547_v16 }
  0xca   :  { %v577_v29 = vmul.f32 %v575_v34, %v568_v49  ;;  %v578_v48 = vmul.f32 %v575_v34, %v572_v20  ;;  %v589_v33 = vmul.f32 %v584_v32, %v575_v34  ;;  %v590_v36 = vmul.f32 %v588_v23, %v575_v34 }
  0xcb   :  { %v1665_v58 = vpop.permute.xlu1 %630  ;;  %v551_v28 = vadd.f32 %v549_v35, %v523_v18  ;;  %v552_v44 = vadd.f32 %v550_v46, %v524_v19  ;;  %v563_v31 = vadd.f32 %v561_v54, %v535_v21  ;;  %v564_v17 = vadd.f32 %v562_v26, %v536_v42 }
  0xcc   :  { %v600_v9 = vrot.slane %v1353_v4, %v1467_v3  ;;  %v596_v45 = vrot.slane %v1346_v2, %v1467_v3  ;;  %v616_v6 = vrot.slane %v1353_v4, %v1469_v5  ;;  %v612_v55 = vrot.slane %v1346_v2, %v1469_v5 }
  0xcd   :  { %v579_v40 = vadd.f32 %v577_v29, %v551_v28  ;;  %v580_v10 = vadd.f32 %v578_v48, %v552_v44  ;;  %v628_v61 = vrot.slane %v1353_v4, %v1472_v8  ;;  %v624_v51 = vrot.slane %v1346_v2, %v1472_v8 }
  0xce   :  { %v591_v7 = vadd.f32 %v589_v33, %v563_v31  ;;  %v592_v12 = vadd.f32 %v590_v36, %v564_v17  ;;  %v644_v30 = vrot.slane %v1353_v4, %v1476_v11  ;;  %v640_v39 = vrot.slane %v1346_v2, %v1476_v11 }
  0xcf   :  { %v605_v14 = vmul.f32 %v1655_v15, %v596_v45  ;;  %v606_v60 = vmul.f32 %v1655_v15, %v600_v9  ;;  %v617_v19 = vmul.f32 %v612_v55, %v1655_v15  ;;  %v618_v20 = vmul.f32 %v616_v6, %v1655_v15  ;;  %v756_v9 = vpop.permute.xlu0 %755 }
  0xd0   :  { %v1689_v24 = vpop.permute.xlu1 %699  ;;  %v633_v42 = vmul.f32 %v1665_v58, %v624_v51  ;;  %v634_v23 = vmul.f32 %v1665_v58, %v628_v61  ;;  %v645_v46 = vmul.f32 %v640_v39, %v1665_v58  ;;  %v646_v54 = vmul.f32 %v644_v30, %v1665_v58 }
  0xd1   :  { %v607_v49 = vadd.f32 %v605_v14, %v579_v40  ;;  %v608_v21 = vadd.f32 %v606_v60, %v580_v10  ;;  %v619_v32 = vadd.f32 %v617_v19, %v591_v7  ;;  %v620_v35 = vadd.f32 %v618_v20, %v592_v12 }
  0xd3   :  { %v635_v29 = vadd.f32 %v633_v42, %v607_v49  ;;  %v636_v48 = vadd.f32 %v634_v23, %v608_v21  ;;  %v647_v33 = vadd.f32 %v645_v46, %v619_v32  ;;  %v648_v58 = vadd.f32 %v646_v54, %v620_v35  ;;  %v775_v30 = vpop.permute.xlu0 %774 }
  0xd4   :  { %v650_v37 = vpop.permute.xlu1 %649 }
  0xd5   :  { %v654_v53 = vsel %vm653_vm14, %v650_v37, %v652_v27  ;;  %v655_v16 = vsel %vm653_vm14, %v652_v27, %v650_v37 }
  0xd6   :  { %v1702_v57 = vsel %vm1523_vm8, %v654_v53, 0.0  ;;  %v1706_v34 = vsel %vm1529_vm9, %v655_v16, 0.0 }
  0xd7   :  { %v665_v0 = vrot.slane %v1702_v57, %v1463_v63  ;;  %v669_v18 = vrot.slane %v1706_v34, %v1463_v63  ;;  %v681_v4 = vrot.slane %v1702_v57, %v1465_v1  ;;  %v685_v2 = vrot.slane %v1706_v34, %v1465_v1 }
  0xd8   :  { %v728_v13 = vpop.permute.xlu1 %727  ;;  %v693_v31 = vrot.slane %v1702_v57, %v1456_v56  ;;  %v697_v17 = vrot.slane %v1706_v34, %v1456_v56  ;;  %v709_v36 = vrot.slane %v1702_v57, %v1458_v59  ;;  %v713_v37 = vrot.slane %v1706_v34, %v1458_v59 }
  0xd9   :  { %v674_v15 = vmul.f32 %v1667_v62, %v665_v0  ;;  %v675_v26 = vmul.f32 %v1667_v62, %v669_v18  ;;  %v686_v28 = vmul.f32 %v681_v4, %v1667_v62  ;;  %v687_v44 = vmul.f32 %v685_v2, %v1667_v62 }
  0xda   :  { %v721_v40 = vrot.slane %v1702_v57, %v1467_v3  ;;  %v725_v10 = vrot.slane %v1706_v34, %v1467_v3  ;;  %v702_v43 = vmul.f32 %v1689_v24, %v693_v31  ;;  %v703_v51 = vmul.f32 %v1689_v24, %v697_v17 }
  0xdb   :  { %v676_v45 = vadd.f32 %v674_v15, %v635_v29  ;;  %v677_v53 = vadd.f32 %v675_v26, %v636_v48  ;;  %v688_v6 = vadd.f32 %v686_v28, %v647_v33  ;;  %v689_v55 = vadd.f32 %v687_v44, %v648_v58 }
  0xdc   :  { %v737_v41 = vrot.slane %v1702_v57, %v1469_v5  ;;  %v741_v47 = vrot.slane %v1706_v34, %v1469_v5  ;;  %v714_v7 = vmul.f32 %v709_v36, %v1689_v24  ;;  %v715_v12 = vmul.f32 %v713_v37, %v1689_v24 }
  0xdd   :  { %v1734_v27 = vpop.permute.xlu1 %798  ;;  %v704_v39 = vadd.f32 %v702_v43, %v676_v45  ;;  %v705_v14 = vadd.f32 %v703_v51, %v677_v53  ;;  %v730_v18 = vmul.f32 %v728_v13, %v721_v40  ;;  %v731_v19 = vmul.f32 %v728_v13, %v725_v10 }
  0xde   :  { %v716_v60 = vadd.f32 %v714_v7, %v688_v6  ;;  %v717_v0 = vadd.f32 %v715_v12, %v689_v55  ;;  %v742_v20 = vmul.f32 %v737_v41, %v728_v13  ;;  %v743_v4 = vmul.f32 %v741_v47, %v728_v13 }
  0xdf   :  { %v749_v21 = vrot.slane %v1702_v57, %v1472_v8  ;;  %v753_v42 = vrot.slane %v1706_v34, %v1472_v8  ;;  %v732_v32 = vadd.f32 %v730_v18, %v704_v39  ;;  %v733_v35 = vadd.f32 %v731_v19, %v705_v14  ;;  %v855_v19 = vpop.permute.xlu0 %854 }
  0xe0   :  { %v765_v13 = vrot.slane %v1702_v57, %v1476_v11  ;;  %v769_v46 = vrot.slane %v1706_v34, %v1476_v11  ;;  %v744_v44 = vadd.f32 %v742_v20, %v716_v60  ;;  %v745_v29 = vadd.f32 %v743_v4, %v717_v0 }
  0xe1   :  { %v758_v57 = vmul.f32 %v756_v9, %v749_v21  ;;  %v759_v48 = vmul.f32 %v756_v9, %v753_v42 }
  0xe2   :  { %v1762_v61 = vpop.permute.xlu1 %826  ;;  %v770_v17 = vmul.f32 %v765_v13, %v756_v9  ;;  %v771_v33 = vmul.f32 %v769_v46, %v756_v9 }
  0xe3   :  { %v760_v37 = vadd.f32 %v758_v57, %v732_v32  ;;  %v761_v45 = vadd.f32 %v759_v48, %v733_v35 }
  0xe4   :  { %v772_v55 = vadd.f32 %v770_v17, %v744_v44  ;;  %v773_v40 = vadd.f32 %v771_v33, %v745_v29 }
  0xe6   :  { %v777_v24 = vpop.permute.xlu1 %776 }
  0xe7   :  { %v779_v2 = vsel %vm778_vm2, %v775_v30, %v777_v24  ;;  %v780_v49 = vsel %vm778_vm2, %v777_v24, %v775_v30 }
  0xe8   :  { %v1790_v52 = vsel %vm781_vm4, %v779_v2, 0.0  ;;  %v1792_v23 = vsel %vm782_vm5, %v780_v49, 0.0 }
  0xe9   :  { %v792_v15 = vrot.slane %v1790_v52, %v1463_v63  ;;  %v796_v50 = vrot.slane %v1792_v23, %v1463_v63  ;;  %v808_v26 = vrot.slane %v1790_v52, %v1465_v1  ;;  %v812_v28 = vrot.slane %v1792_v23, %v1465_v1 }
  0xea   :  { %v1798_v54 = vpop.permute.xlu1 %882  ;;  %v820_v53 = vrot.slane %v1790_v52, %v1456_v56  ;;  %v824_v6 = vrot.slane %v1792_v23, %v1456_v56  ;;  %v836_v10 = vrot.slane %v1790_v52, %v1458_v59  ;;  %v840_v9 = vrot.slane %v1792_v23, %v1458_v59 }
  0xeb   :  { %v801_v34 = vmul.f32 %v1734_v27, %v792_v15  ;;  %v802_v31 = vmul.f32 %v1734_v27, %v796_v50  ;;  %v813_v58 = vmul.f32 %v808_v26, %v1734_v27  ;;  %v814_v36 = vmul.f32 %v812_v28, %v1734_v27 }
  0xec   :  { %v829_v7 = vmul.f32 %v1762_v61, %v820_v53  ;;  %v830_v12 = vmul.f32 %v1762_v61, %v824_v6  ;;  %v848_v30 = vrot.slane %v1790_v52, %v1467_v3  ;;  %v852_v39 = vrot.slane %v1792_v23, %v1467_v3 }
  0xed   :  { %v804_v51 = vadd.f32 %v802_v31, %v761_v45  ;;  %v803_v41 = vadd.f32 %v801_v34, %v760_v37  ;;  %v816_v27 = vadd.f32 %v814_v36, %v773_v40  ;;  %v815_v47 = vadd.f32 %v813_v58, %v772_v55 }
  0xee   :  { %v841_v14 = vmul.f32 %v836_v10, %v1762_v61  ;;  %v842_v60 = vmul.f32 %v840_v9, %v1762_v61  ;;  %v864_v0 = vrot.slane %v1790_v52, %v1469_v5  ;;  %v868_v18 = vrot.slane %v1792_v23, %v1469_v5 }
  0xef   :  { %v924_v43 = vpop.permute.xlu1 %923  ;;  %v832_v20 = vadd.f32 %v830_v12, %v804_v51  ;;  %v831_v4 = vadd.f32 %v829_v7, %v803_v41  ;;  %v876_v21 = vrot.slane %v1790_v52, %v1472_v8  ;;  %v880_v61 = vrot.slane %v1792_v23, %v1472_v8 }
  0xf0   :  { %v844_v2 = vadd.f32 %v842_v60, %v816_v27  ;;  %v843_v49 = vadd.f32 %v841_v14, %v815_v47  ;;  %v857_v42 = vmul.f32 %v855_v19, %v848_v30  ;;  %v858_v32 = vmul.f32 %v855_v19, %v852_v39  ;;  %v952_v47 = vpop.permute.xlu0 %951 }
  0xf1   :  { %v892_v35 = vrot.slane %v1790_v52, %v1476_v11  ;;  %v896_v13 = vrot.slane %v1792_v23, %v1476_v11  ;;  %v869_v46 = vmul.f32 %v864_v0, %v855_v19  ;;  %v870_v15 = vmul.f32 %v868_v18, %v855_v19 }
  0xf2   :  { %v859_v26 = vadd.f32 %v857_v42, %v831_v4  ;;  %v860_v28 = vadd.f32 %v858_v32, %v832_v20  ;;  %v885_v58 = vmul.f32 %v1798_v54, %v876_v21  ;;  %v886_v36 = vmul.f32 %v1798_v54, %v880_v61 }
  0xf3   :  { %v902_v24 = vpop.permute.xlu1 %901  ;;  %v871_v57 = vadd.f32 %v869_v46, %v843_v49  ;;  %v872_v48 = vadd.f32 %v870_v15, %v844_v2  ;;  %v897_v37 = vmul.f32 %v892_v35, %v1798_v54  ;;  %v898_v45 = vmul.f32 %v896_v13, %v1798_v54 }
  0xf4   :  { %v887_v7 = vadd.f32 %v885_v58, %v859_v26  ;;  %v888_v54 = vadd.f32 %v886_v36, %v860_v28  ;;  %v980_v61 = vpop.permute.xlu0 %979 }
  0xf5   :  { %v899_v12 = vadd.f32 %v897_v37, %v871_v57  ;;  %v900_v30 = vadd.f32 %v898_v45, %v872_v48 }
  0xf7   :  { %v904_v50 = vpop.permute.xlu1 %903 }
  0xf8   :  { %v906_v44 = vsel %vm905_vm1, %v902_v24, %v904_v50  ;;  %v907_v29 = vsel %vm905_vm1, %v904_v50, %v902_v24 }
  0xf9   :  { %v1843_v34 = vsel %vm1748_vm15, %v906_v44, 0.0  ;;  %v1847_v31 = vsel %vm1754_vm0, %v907_v29, 0.0 }
  0xfa   :  { %v917_v52 = vrot.slane %v1843_v34, %v1463_v63  ;;  %v921_v23 = vrot.slane %v1847_v31, %v1463_v63  ;;  %v933_v17 = vrot.slane %v1843_v34, %v1465_v1  ;;  %v937_v33 = vrot.slane %v1847_v31, %v1465_v1 }
  0xfb   :  { %v1008_v53 = vpop.permute.xlu1 %1007  ;;  %v945_v9 = vrot.slane %v1843_v34, %v1456_v56  ;;  %v949_v51 = vrot.slane %v1847_v31, %v1456_v56  ;;  %v961_v41 = vrot.slane %v1843_v34, %v1458_v59  ;;  %v965_v27 = vrot.slane %v1847_v31, %v1458_v59 }
  0xfc   :  { %v926_v6 = vmul.f32 %v924_v43, %v917_v52  ;;  %v927_v55 = vmul.f32 %v924_v43, %v921_v23  ;;  %v938_v40 = vmul.f32 %v933_v17, %v924_v43  ;;  %v939_v10 = vmul.f32 %v937_v33, %v924_v43 }
  0xfd   :  { %v954_v18 = vmul.f32 %v952_v47, %v945_v9  ;;  %v955_v19 = vmul.f32 %v952_v47, %v949_v51  ;;  %v966_v24 = vmul.f32 %v961_v41, %v952_v47  ;;  %v967_v20 = vmul.f32 %v965_v27, %v952_v47 }
  0xfe   :  { %v929_v39 = vadd.f32 %v927_v55, %v888_v54  ;;  %v941_v14 = vadd.f32 %v939_v10, %v900_v30  ;;  %v928_v43 = vadd.f32 %v926_v6, %v887_v7  ;;  %v940_v60 = vadd.f32 %v938_v40, %v899_v12  ;;  %v1079_v6 = vpop.permute.xlu0 %1078 }
  0xff   :  { %v973_v4 = vrot.slane %v1843_v34, %v1467_v3  ;;  %v977_v2 = vrot.slane %v1847_v31, %v1467_v3  ;;  %v989_v49 = vrot.slane %v1843_v34, %v1469_v5  ;;  %v993_v21 = vrot.slane %v1847_v31, %v1469_v5 }
 0x100   :  { %v1869_v0 = vpop.permute.xlu1 %1050  ;;  %v956_v42 = vadd.f32 %v954_v18, %v928_v43  ;;  %v957_v32 = vadd.f32 %v955_v19, %v929_v39  ;;  %v968_v35 = vadd.f32 %v966_v24, %v940_v60  ;;  %v969_v13 = vadd.f32 %v967_v20, %v941_v14 }
 0x101   :  { %v1001_v15 = vrot.slane %v1843_v34, %v1472_v8  ;;  %v1005_v50 = vrot.slane %v1847_v31, %v1472_v8  ;;  %v1017_v26 = vrot.slane %v1843_v34, %v1476_v11  ;;  %v1021_v28 = vrot.slane %v1847_v31, %v1476_v11 }
 0x102   :  { %v982_v44 = vmul.f32 %v980_v61, %v973_v4  ;;  %v983_v29 = vmul.f32 %v980_v61, %v977_v2  ;;  %v994_v57 = vmul.f32 %v989_v49, %v980_v61  ;;  %v995_v48 = vmul.f32 %v993_v21, %v980_v61  ;;  %v1107_v18 = vpop.permute.xlu0 %1106 }
 0x103   :  { %v1010_v31 = vmul.f32 %v1008_v53, %v1001_v15  ;;  %v1011_v58 = vmul.f32 %v1008_v53, %v1005_v50  ;;  %v1022_v62 = vmul.f32 %v1017_v26, %v1008_v53  ;;  %v1023_v37 = vmul.f32 %v1021_v28, %v1008_v53 }
 0x104   :  { %v1027_v46 = vpop.permute.xlu1 %1026  ;;  %v984_v52 = vadd.f32 %v982_v44, %v956_v42  ;;  %v985_v23 = vadd.f32 %v983_v29, %v957_v32  ;;  %v996_v34 = vadd.f32 %v994_v57, %v968_v35  ;;  %v997_v17 = vadd.f32 %v995_v48, %v969_v13 }
 0x106   :  { %v1012_v16 = vadd.f32 %v1010_v31, %v984_v52  ;;  %v1013_v55 = vadd.f32 %v1011_v58, %v985_v23  ;;  %v1024_v40 = vadd.f32 %v1022_v62, %v996_v34  ;;  %v1025_v10 = vadd.f32 %v1023_v37, %v997_v17 }
 0x108   :  { %v1029_v33 = vpop.permute.xlu1 %1028 }
 0x109   :  { %v1031_v36 = vsel %vm1030_vm3, %v1027_v46, %v1029_v33  ;;  %v1032_v22 = vsel %vm1030_vm3, %v1029_v33, %v1027_v46 }
 0x10a   :  { %v1039_v45 = vsel %vm1033_vm6, %v1031_v36, 0.0  ;;  %v1040_v25 = vsel %vm1034_vm7, %v1032_v22, 0.0 }
 0x10b   :  { %v1072_v9 = vrot.slane %v1039_v45, %v1456_v56  ;;  %v1076_v51 = vrot.slane %v1040_v25, %v1456_v56  ;;  %v1088_v41 = vrot.slane %v1039_v45, %v1458_v59  ;;  %v1092_v27 = vrot.slane %v1040_v25, %v1458_v59 }
 0x10c   :  { %v1128_v38 = vrot.slane %v1039_v45, %v1472_v8  ;;  %v1132_v47 = vrot.slane %v1040_v25, %v1472_v8  ;;  %v1144_v53 = vrot.slane %v1039_v45, %v1476_v11  ;;  %v1148_v7 = vrot.slane %v1040_v25, %v1476_v11  ;;  %v1135_v4 = vpop.permute.xlu1 %1134 }
 0x10d   :  { %v1044_v54 = vrot.slane %v1039_v45, %v1463_v63  ;;  %v1048_v12 = vrot.slane %v1040_v25, %v1463_v63  ;;  %v1060_v30 = vrot.slane %v1039_v45, %v1465_v1  ;;  %v1064_v56 = vrot.slane %v1040_v25, %v1465_v1 }
 0x10e   :  { %v1100_v39 = vrot.slane %v1039_v45, %v1467_v3  ;;  %v1104_v59 = vrot.slane %v1040_v25, %v1467_v3  ;;  %v1116_v14 = vrot.slane %v1039_v45, %v1469_v5  ;;  %v1120_v8 = vrot.slane %v1040_v25, %v1469_v5 }
 0x10f   :  { %v1053_v43 = vmul.f32 %v1869_v0, %v1044_v54  ;;  %v1054_v11 = vmul.f32 %v1869_v0, %v1048_v12  ;;  %v1065_v60 = vmul.f32 %v1060_v30, %v1869_v0  ;;  %v1066_v63 = vmul.f32 %v1064_v56, %v1869_v0 }
 0x110   :  { %v1081_v19 = vmul.f32 %v1079_v6, %v1072_v9  ;;  %v1082_v24 = vmul.f32 %v1079_v6, %v1076_v51  ;;  %v1093_v1 = vmul.f32 %v1088_v41, %v1079_v6  ;;  %v1094_v20 = vmul.f32 %v1092_v27, %v1079_v6  ;;  %v1272_v51 = vld [vmem:[%s1939_s0 + $0x8] sm:$0xff] }
 0x111   :  { %v1056_v2 = vadd.f32 %v1054_v11, %v1013_v55  ;;  %v1068_v3 = vadd.f32 %v1066_v63, %v1025_v10  ;;  %v1055_v49 = vadd.f32 %v1053_v43, %v1012_v16  ;;  %v1067_v21 = vadd.f32 %v1065_v60, %v1024_v40  ;;  %v1157_v52 = vpop.permute.xlu1 %1156  ;;  %v1271_v10 = vld [vmem:[%s1939_s0] sm:$0xff] }
 0x112   :  { %v1109_v61 = vmul.f32 %v1107_v18, %v1100_v39  ;;  %v1110_v5 = vmul.f32 %v1107_v18, %v1104_v59  ;;  %v1121_v42 = vmul.f32 %v1116_v14, %v1107_v18  ;;  %v1122_v32 = vmul.f32 %v1120_v8, %v1107_v18 }
 0x113   :  { %v1084_v35 = vadd.f32 %v1082_v24, %v1056_v2  ;;  %v1096_v13 = vadd.f32 %v1094_v20, %v1068_v3  ;;  %v1083_v46 = vadd.f32 %v1081_v19, %v1055_v49  ;;  %v1095_v15 = vadd.f32 %v1093_v1, %v1067_v21 }
 0x114   :  { %v1137_v50 = vmul.f32 %v1135_v4, %v1128_v38  ;;  %v1138_v0 = vmul.f32 %v1135_v4, %v1132_v47  ;;  %v1149_v26 = vmul.f32 %v1144_v53, %v1135_v4  ;;  %v1150_v28 = vmul.f32 %v1148_v7, %v1135_v4 }
 0x115   :  { %v1111_v44 = vadd.f32 %v1109_v61, %v1083_v46  ;;  %v1112_v29 = vadd.f32 %v1110_v5, %v1084_v35  ;;  %v1123_v57 = vadd.f32 %v1121_v42, %v1095_v15  ;;  %v1124_v48 = vadd.f32 %v1122_v32, %v1096_v13 }
 0x117   :  { %v1139_v23 = vadd.f32 %v1137_v50, %v1111_v44  ;;  %v1140_v34 = vadd.f32 %v1138_v0, %v1112_v29  ;;  %v1151_v17 = vadd.f32 %v1149_v26, %v1123_v57  ;;  %v1152_v33 = vadd.f32 %v1150_v28, %v1124_v48 }
 0x119   :  { %v1159_v31 = vadd.f32 %v1157_v52, %v1139_v23  ;;  %v1160_v58 = vadd.f32 %v1157_v52, %v1140_v34  ;;  %v1169_v36 = vadd.f32 %v1157_v52, %v1151_v17  ;;  %v1170_v22 = vadd.f32 %v1157_v52, %v1152_v33 }
 0x11b   :  { %v1161_v62 = vmax.f32 %v1159_v31, 0.0  ;;  %v1162_v37 = vmax.f32 %v1160_v58, 0.0  ;;  %v1171_v45 = vmax.f32 %v1169_v36, 0.0  ;;  %v1172_v25 = vmax.f32 %v1170_v22, 0.0 }
 0x11d   :  { %v1163_v6 = vmin.f32 %v1161_v62, 1.0  ;;  %v1164_v16 = vmin.f32 %v1162_v37, 1.0  ;;  %v1173_v55 = vmin.f32 %v1171_v45, 1.0  ;;  %v1174_v40 = vmin.f32 %v1172_v25, 1.0 }
 0x11f   :  { %v1165_v9 = vmul.f32 %v1271_v10, %v1163_v6  ;;  %v1166_v41 = vmul.f32 %v1272_v51, %v1164_v16  ;;  %v1177_v27 = vrot.slane %v1173_v55, 4  ;;  %v1178_v38 = vrot.slane %v1174_v40, 4 }
 0x121   :  { %1167 = vst [vmem:[%s1941_s3] sm:$0xf] %v1165_v9  ;;  %1168 = vst [vmem:[%s1941_s3 + $0x8] sm:$0xf] %v1166_v41  ;;  %v1181_v47 = vmul.f32 %v1271_v10, %v1177_v27  ;;  %v1182_v53 = vmul.f32 %v1272_v51, %v1178_v38 }
 0x123   :  { %1183 = vst [vmem:[%s1941_s3] sm:$0xf0] %v1181_v47  ;;  %1184 = vst [vmem:[%s1941_s3 + $0x8] sm:$0xf0] %v1182_v53 }

</bundles_post_ra>
